<compile_context>
chip_gen: v6e
topology: v6e:2x2x1
jax: 0.10.0
libtpu: 0.0.40
codegen_flags: <defaults>
</compile_context>

<pallas_src>
import math
import functools

import jax
import jax.numpy as jnp
from jax.experimental import pallas as pl
from jax.experimental.pallas import tpu as pltpu

_SQRT2 = math.sqrt(2.0)
_INV_SQRT_2PI = 1.0 / math.sqrt(2.0 * math.pi)


# ----------------------------- kernel-side math ------------------------------
def _phi(z):
    # standard normal pdf
    return jnp.exp(-0.5 * z * z) * _INV_SQRT_2PI


def _Phi(z):
    # standard normal cdf
    return 0.5 * (1.0 + jax.lax.erf(z * (1.0 / _SQRT2)))


def _pn_linear(mean, std, wT, wT_sq, b):
    """Probabilistic-numeric Linear: mean @ W.T + b ; std = sqrt(std^2 @ (W.T)^2).

    wT_sq (= wT * wT) is precomputed outside the kernel (loop-invariant)."""
    m = jnp.dot(mean, wT, preferred_element_type=jnp.float32) + b
    var = jnp.dot(std * std, wT_sq, preferred_element_type=jnp.float32)
    s = jnp.sqrt(jnp.maximum(var, 1e-7))
    return m, s


def _srelu(mean, std):
    """sReLU: propagate (mean, std) of a Gaussian through a ReLU."""
    s = jnp.maximum(std + 1e-6, 1e-6)
    inv_s = pl.reciprocal(s, approx=True)        # EUP slot, frees the VALU
    z = mean * inv_s
    Phis = _Phi(z)
    dens = _phi(z)
    m_out = mean * Phis + s * dens
    var = (mean * mean + s * s) * Phis + mean * s * dens - m_out * m_out + 1e-6
    s_out = jnp.sqrt(jnp.maximum(var, 1e-6))
    return m_out, s_out


def _make_fused_kernel(num_layers, inv_T):
    """Fused kernel: all ReLuLinearConvGP blocks + time reduction + final head."""

    def kernel(*refs):
        # refs layout:
        #   [mean, std, red]
        #   + [w1T, w1T_sq, b1, w2T, w2T_sq, b2] * num_layers
        #   + [wfT, wfT_sq, bf]
        #   + [out]
        mean_ref, std_ref, red_ref = refs[0], refs[1], refs[2]
        out_ref = refs[-1]
        wrefs = refs[3:-1]

        m = mean_ref[...]
        s = std_ref[...]

        # ---- ReLuLinearConvGP blocks: PN-Linear -> sReLU -> PN-Linear --------
        idx = 0
        for _ in range(num_layers):
            w1T, w1sq, b1 = wrefs[idx][...], wrefs[idx + 1][...], wrefs[idx + 2][...]
            w2T, w2sq, b2 = wrefs[idx + 3][...], wrefs[idx + 4][...], wrefs[idx + 5][...]
            idx += 6
            # TODO(synk): LinearOperatorGP (HeatRBF kernel) definition not provided —
            # replaced by the PN-Linear propagation rule with identical (mean,std) semantics.
            m, s = _pn_linear(m, s, w1T, w1sq, b1)
            m, s = _srelu(m, s)
            m, s = _pn_linear(m, s, w2T, w2sq, b2)

        # ---- IntegralGP stand-in: mean over the time axis --------------------
        # TODO(synk): IntegralGP definition not provided — stand-in: mean over time with
        # independent-Gaussian uncertainty propagation, expressed as a matmul with a
        # precomputed (B, B*T) batch-reduction matrix (keeps the kernel reshape-free).
        red = red_ref[...]
        m_i = jnp.dot(red, m, preferred_element_type=jnp.float32) * inv_T
        var_i = jnp.dot(red, s * s, preferred_element_type=jnp.float32) * (inv_T * inv_T)
        s_i = jnp.sqrt(jnp.maximum(var_i, 0.0))

        # ---- final PN-Linear head (k -> num_targets), GetMean -> mean only ---
        wfT, wfsq, bf = wrefs[idx][...], wrefs[idx + 1][...], wrefs[idx + 2][...]
        m_o, _s_o = _pn_linear(m_i, s_i, wfT, wfsq, bf)
        out_ref[...] = m_o

    return kernel


# ----------------------------- pallas_call wrapper ----------------------------
def fused_forward_call(mean, std, red, layer_params, final_params):
    """One pallas_call for the whole network; all activations stay in VMEM."""
    N, Cin = mean.shape
    B = red.shape[0]
    T = N // B
    num_layers = len(layer_params)
    num_targets = final_params[0].shape[1]

    flat_w = []
    w_specs = []
    for layer in layer_params:
        for w in layer:                       # w1T, w1T_sq, b1, w2T, w2T_sq, b2
            flat_w.append(w)
            w_specs.append(pl.BlockSpec(w.shape, lambda i: (0, 0)))
    for w in final_params:                    # wfT, wfT_sq, bf
        flat_w.append(w)
        w_specs.append(pl.BlockSpec(w.shape, lambda i: (0, 0)))

    kernel = _make_fused_kernel(num_layers, 1.0 / T)
    return pl.pallas_call(
        kernel,
        out_shape=jax.ShapeDtypeStruct((B, num_targets), jnp.float32),
        grid=(1,),
        in_specs=[pl.BlockSpec((N, Cin), lambda i: (0, 0)),
                  pl.BlockSpec((N, Cin), lambda i: (0, 0)),
                  pl.BlockSpec((B, N), lambda i: (0, 0))] + w_specs,
        out_specs=pl.BlockSpec((B, num_targets), lambda i: (0, 0)),
        compiler_params=pltpu.CompilerParams(
            dimension_semantics=("arbitrary",)),
    )(mean, std, red, *flat_w)


# ----------------------------- parameters ------------------------------------
def init_params(key, channels_in, k, num_layers, num_targets):
    """Deterministic nn.Linear-style init (uniform +-1/sqrt(fan_in)).

    Squared weights for the uncertainty path are precomputed here once, so the
    kernel never re-squares loop-invariant weights."""
    params = {"blocks": []}
    chin = channels_in
    for _ in range(num_layers):
        key, k1, k2, k3, k4 = jax.random.split(key, 5)
        b1nd = 1.0 / math.sqrt(chin)
        w1 = jax.random.uniform(k1, (k, chin), jnp.float32, -b1nd, b1nd)
        b1 = jax.random.uniform(k2, (k,), jnp.float32, -b1nd, b1nd)
        b2nd = 1.0 / math.sqrt(k)
        w2 = jax.random.uniform(k3, (k, k), jnp.float32, -b2nd, b2nd)
        b2 = jax.random.uniform(k4, (k,), jnp.float32, -b2nd, b2nd)
        w1T = w1.T
        w2T = w2.T
        params["blocks"].append(
            (w1T, w1T * w1T, b1[None, :], w2T, w2T * w2T, b2[None, :]))
        chin = k
    key, k1, k2 = jax.random.split(key, 3)
    bnd = 1.0 / math.sqrt(k)
    wf = jax.random.uniform(k1, (num_targets, k), jnp.float32, -bnd, bnd)
    bf = jax.random.uniform(k2, (num_targets,), jnp.float32, -bnd, bnd)
    wfT = wf.T
    params["final"] = (wfT, wfT * wfT, bf[None, :])
    params["_unc"] = jnp.float32(-2.0)     # PNCNN._unc
    params["_gp_unc"] = jnp.float32(-1.0)  # PhysioPNCNN_simple._gp_unc (unused: GP layer is a TODO)
    return params


# ----------------------------- forward ----------------------------------------
def physio_pncnn_simple_forward(params, coords, vals, demos, mask):
    B, T, Cv = vals.shape
    if demos.shape[-1]:
        D = demos.shape[-1]
        const_time_demos = jnp.broadcast_to(demos[:, None, :], (B, T, D))
        any_vitals = (jnp.sum(mask, axis=-1) > 0).astype(jnp.float32)[..., None]
        any_vitals = jnp.broadcast_to(any_vitals, (B, T, D))
        demos_mask = (~jnp.isnan(const_time_demos)).astype(jnp.float32) * any_vitals
        mask = jnp.concatenate([mask, demos_mask], axis=2)
        zeroed_demos = jnp.where(demos_mask > 0, const_time_demos,
                                 jnp.zeros_like(const_time_demos))
        vals = jnp.concatenate([vals, zeroed_demos], axis=2)

    stdin = jnp.ones_like(vals) * jax.nn.softplus(params["_unc"])

    C = vals.shape[-1]
    mean = vals.reshape(B * T, C)
    std = stdin.reshape(B * T, C)

    # TODO(synk): GPinterpolateLayer definition not provided upstream — treated as an
    # identity pass-through of (mean, std) on the existing time grid (mask unused downstream).

    # Batch-reduction matrix for the in-kernel time average: red[b, b*T + t] = 1.
    row_batch = jax.lax.broadcasted_iota(jnp.int32, (B, B * T), 1) // T
    red = (row_batch == jax.lax.broadcasted_iota(jnp.int32, (B, B * T), 0)).astype(jnp.float32)

    # Single fused kernel: all blocks + time reduction + final head (GetMean -> mean only).
    return fused_forward_call(mean, std, red, params["blocks"], params["final"])


# ----------------------------- main --------------------------------------------
if __name__ == "__main__":
    key = jax.random.PRNGKey(0)
    B, T, Cv, Dd = 2, 16, 4, 5          # batch, time steps, vitals channels, demographics
    k_hidden, num_layers, num_targets = 32, 3, 1

    kp, kv, kd, km = jax.random.split(key, 4)
    params = init_params(kp, channels_in=Cv + Dd, k=k_hidden,
                         num_layers=num_layers, num_targets=num_targets)

    coords = jnp.broadcast_to(jnp.linspace(0.0, 1.0, T)[None, :, None], (B, T, 1))
    vals = jax.random.normal(kv, (B, T, Cv), jnp.float32)
    demos = jax.random.normal(kd, (B, Dd), jnp.float32)
    demos = demos.at[0, 2].set(jnp.nan)   # exercise the NaN-demographics masking path
    mask = (jax.random.uniform(km, (B, T, Cv)) > 0.3).astype(jnp.float32)

    fwd = jax.jit(functools.partial(physio_pncnn_simple_forward, params))
    out = fwd(coords, vals, demos, mask)
    out = jax.block_until_ready(out)

    assert out.shape == (B, num_targets), out.shape
    assert not bool(jnp.any(jnp.isnan(out)))
    print("KERNEL_OK")
</pallas_src>

<mosaic_0001>
module attributes {stable_mosaic.version = 11 : i64} {
  func.func @kernel(%arg0: i32, %arg1: memref<32x9xf32, #tpu.memory_space<vmem>>, %arg2: memref<32x9xf32, #tpu.memory_space<vmem>>, %arg3: memref<2x32xf32, #tpu.memory_space<vmem>>, %arg4: memref<9x32xf32, #tpu.memory_space<vmem>>, %arg5: memref<9x32xf32, #tpu.memory_space<vmem>>, %arg6: memref<1x32xf32, #tpu.memory_space<vmem>>, %arg7: memref<32x32xf32, #tpu.memory_space<vmem>>, %arg8: memref<32x32xf32, #tpu.memory_space<vmem>>, %arg9: memref<1x32xf32, #tpu.memory_space<vmem>>, %arg10: memref<32x32xf32, #tpu.memory_space<vmem>>, %arg11: memref<32x32xf32, #tpu.memory_space<vmem>>, %arg12: memref<1x32xf32, #tpu.memory_space<vmem>>, %arg13: memref<32x32xf32, #tpu.memory_space<vmem>>, %arg14: memref<32x32xf32, #tpu.memory_space<vmem>>, %arg15: memref<1x32xf32, #tpu.memory_space<vmem>>, %arg16: memref<32x32xf32, #tpu.memory_space<vmem>>, %arg17: memref<32x32xf32, #tpu.memory_space<vmem>>, %arg18: memref<1x32xf32, #tpu.memory_space<vmem>>, %arg19: memref<32x32xf32, #tpu.memory_space<vmem>>, %arg20: memref<32x32xf32, #tpu.memory_space<vmem>>, %arg21: memref<1x32xf32, #tpu.memory_space<vmem>>, %arg22: memref<32x1xf32, #tpu.memory_space<vmem>>, %arg23: memref<32x1xf32, #tpu.memory_space<vmem>>, %arg24: memref<1x1xf32, #tpu.memory_space<vmem>>, %arg25: memref<2x1xf32, #tpu.memory_space<vmem>>) attributes {dimension_semantics = [#tpu.dimension_semantics<arbitrary>], iteration_bounds = array<i64: 1>, scalar_prefetch = 0 : i64, scratch_operands = 0 : i64, tpu.core_type = #tpu.core_type<tc>, window_params = [{pipeline_mode = #tpu.pipeline_mode<synchronous>, transform_indices = @transform_0, window_bounds = array<i64: 32, 9>}, {pipeline_mode = #tpu.pipeline_mode<synchronous>, transform_indices = @transform_1, window_bounds = array<i64: 32, 9>}, {pipeline_mode = #tpu.pipeline_mode<synchronous>, transform_indices = @transform_2, window_bounds = array<i64: 2, 32>}, {pipeline_mode = #tpu.pipeline_mode<synchronous>, transform_indices = @transform_3, window_bounds = array<i64: 9, 32>}, {pipeline_mode = #tpu.pipeline_mode<synchronous>, transform_indices = @transform_4, window_bounds = array<i64: 9, 32>}, {pipeline_mode = #tpu.pipeline_mode<synchronous>, transform_indices = @transform_5, window_bounds = array<i64: 1, 32>}, {pipeline_mode = #tpu.pipeline_mode<synchronous>, transform_indices = @transform_6, window_bounds = array<i64: 32, 32>}, {pipeline_mode = #tpu.pipeline_mode<synchronous>, transform_indices = @transform_7, window_bounds = array<i64: 32, 32>}, {pipeline_mode = #tpu.pipeline_mode<synchronous>, transform_indices = @transform_8, window_bounds = array<i64: 1, 32>}, {pipeline_mode = #tpu.pipeline_mode<synchronous>, transform_indices = @transform_9, window_bounds = array<i64: 32, 32>}, {pipeline_mode = #tpu.pipeline_mode<synchronous>, transform_indices = @transform_10, window_bounds = array<i64: 32, 32>}, {pipeline_mode = #tpu.pipeline_mode<synchronous>, transform_indices = @transform_11, window_bounds = array<i64: 1, 32>}, {pipeline_mode = #tpu.pipeline_mode<synchronous>, transform_indices = @transform_12, window_bounds = array<i64: 32, 32>}, {pipeline_mode = #tpu.pipeline_mode<synchronous>, transform_indices = @transform_13, window_bounds = array<i64: 32, 32>}, {pipeline_mode = #tpu.pipeline_mode<synchronous>, transform_indices = @transform_14, window_bounds = array<i64: 1, 32>}, {pipeline_mode = #tpu.pipeline_mode<synchronous>, transform_indices = @transform_15, window_bounds = array<i64: 32, 32>}, {pipeline_mode = #tpu.pipeline_mode<synchronous>, transform_indices = @transform_16, window_bounds = array<i64: 32, 32>}, {pipeline_mode = #tpu.pipeline_mode<synchronous>, transform_indices = @transform_17, window_bounds = array<i64: 1, 32>}, {pipeline_mode = #tpu.pipeline_mode<synchronous>, transform_indices = @transform_18, window_bounds = array<i64: 32, 32>}, {pipeline_mode = #tpu.pipeline_mode<synchronous>, transform_indices = @transform_19, window_bounds = array<i64: 32, 32>}, {pipeline_mode = #tpu.pipeline_mode<synchronous>, transform_indices = @transform_20, window_bounds = array<i64: 1, 32>}, {pipeline_mode = #tpu.pipeline_mode<synchronous>, transform_indices = @transform_21, window_bounds = array<i64: 32, 1>}, {pipeline_mode = #tpu.pipeline_mode<synchronous>, transform_indices = @transform_22, window_bounds = array<i64: 32, 1>}, {pipeline_mode = #tpu.pipeline_mode<synchronous>, transform_indices = @transform_23, window_bounds = array<i64: 1, 1>}, {pipeline_mode = #tpu.pipeline_mode<synchronous>, transform_indices = @transform_24, window_bounds = array<i64: 2, 1>}]} {
    %c0 = arith.constant 0 : index
    %c0_0 = arith.constant 0 : index
    %0 = vector.load %arg1[%c0, %c0_0] : memref<32x9xf32, #tpu.memory_space<vmem>>, vector<32x9xf32>
    %c0_1 = arith.constant 0 : index
    %c0_2 = arith.constant 0 : index
    %1 = vector.load %arg2[%c0_1, %c0_2] : memref<32x9xf32, #tpu.memory_space<vmem>>, vector<32x9xf32>
    %c0_3 = arith.constant 0 : index
    %c0_4 = arith.constant 0 : index
    %2 = vector.load %arg4[%c0_3, %c0_4] : memref<9x32xf32, #tpu.memory_space<vmem>>, vector<9x32xf32>
    %c0_5 = arith.constant 0 : index
    %c0_6 = arith.constant 0 : index
    %3 = vector.load %arg5[%c0_5, %c0_6] : memref<9x32xf32, #tpu.memory_space<vmem>>, vector<9x32xf32>
    %c0_7 = arith.constant 0 : index
    %c0_8 = arith.constant 0 : index
    %4 = vector.load %arg6[%c0_7, %c0_8] : memref<1x32xf32, #tpu.memory_space<vmem>>, vector<1x32xf32>
    %c0_9 = arith.constant 0 : index
    %c0_10 = arith.constant 0 : index
    %5 = vector.load %arg7[%c0_9, %c0_10] : memref<32x32xf32, #tpu.memory_space<vmem>>, vector<32x32xf32>
    %c0_11 = arith.constant 0 : index
    %c0_12 = arith.constant 0 : index
    %6 = vector.load %arg8[%c0_11, %c0_12] : memref<32x32xf32, #tpu.memory_space<vmem>>, vector<32x32xf32>
    %c0_13 = arith.constant 0 : index
    %c0_14 = arith.constant 0 : index
    %7 = vector.load %arg9[%c0_13, %c0_14] : memref<1x32xf32, #tpu.memory_space<vmem>>, vector<1x32xf32>
    %cst = arith.constant dense<0.000000e+00> : vector<32x32xf32>
    %8 = tpu.matmul %0, %2, %cst {dimension_numbers = #tpu.dot_dimension_numbers<[1], [0], [0], [1], [0, 0, 1, 1], [], []>} : vector<32x9xf32>, vector<9x32xf32>, vector<32x32xf32> -> vector<32x32xf32>
    %9 = vector.broadcast %4 : vector<1x32xf32> to vector<32x32xf32>
    %10 = arith.addf %8, %9 : vector<32x32xf32>
    %11 = arith.mulf %1, %1 : vector<32x9xf32>
    %cst_15 = arith.constant dense<0.000000e+00> : vector<32x32xf32>
    %12 = tpu.matmul %11, %3, %cst_15 {dimension_numbers = #tpu.dot_dimension_numbers<[1], [0], [0], [1], [0, 0, 1, 1], [], []>} : vector<32x9xf32>, vector<9x32xf32>, vector<32x32xf32> -> vector<32x32xf32>
    %cst_16 = arith.constant 1.000000e-07 : f32
    %13 = vector.broadcast %cst_16 : f32 to vector<32x32xf32>
    %14 = arith.maximumf %12, %13 : vector<32x32xf32>
    %15 = math.sqrt %14 : vector<32x32xf32>
    %cst_17 = arith.constant 9.99999997E-7 : f32
    %16 = vector.broadcast %cst_17 : f32 to vector<32x32xf32>
    %17 = arith.addf %15, %16 : vector<32x32xf32>
    %cst_18 = arith.constant 9.99999997E-7 : f32
    %18 = vector.broadcast %cst_18 : f32 to vector<32x32xf32>
    %19 = arith.maximumf %17, %18 : vector<32x32xf32>
    %20 = tpu.reciprocal %19 {approx = true} : vector<32x32xf32> -> vector<32x32xf32>
    %21 = arith.mulf %10, %20 : vector<32x32xf32>
    %cst_19 = arith.constant 0.707106769 : f32
    %22 = vector.broadcast %cst_19 : f32 to vector<32x32xf32>
    %23 = arith.mulf %21, %22 : vector<32x32xf32>
    %24 = math.erf %23 : vector<32x32xf32>
    %cst_20 = arith.constant 1.000000e+00 : f32
    %25 = vector.broadcast %cst_20 : f32 to vector<32x32xf32>
    %26 = arith.addf %25, %24 : vector<32x32xf32>
    %cst_21 = arith.constant 5.000000e-01 : f32
    %27 = vector.broadcast %cst_21 : f32 to vector<32x32xf32>
    %28 = arith.mulf %27, %26 : vector<32x32xf32>
    %cst_22 = arith.constant -5.000000e-01 : f32
    %29 = vector.broadcast %cst_22 : f32 to vector<32x32xf32>
    %30 = arith.mulf %29, %21 : vector<32x32xf32>
    %31 = arith.mulf %30, %21 : vector<32x32xf32>
    %32 = math.exp %31 : vector<32x32xf32>
    %cst_23 = arith.constant 0.398942292 : f32
    %33 = vector.broadcast %cst_23 : f32 to vector<32x32xf32>
    %34 = arith.mulf %32, %33 : vector<32x32xf32>
    %35 = arith.mulf %10, %28 : vector<32x32xf32>
    %36 = arith.mulf %19, %34 : vector<32x32xf32>
    %37 = arith.addf %35, %36 : vector<32x32xf32>
    %38 = arith.mulf %10, %10 : vector<32x32xf32>
    %39 = arith.mulf %19, %19 : vector<32x32xf32>
    %40 = arith.addf %38, %39 : vector<32x32xf32>
    %41 = arith.mulf %40, %28 : vector<32x32xf32>
    %42 = arith.mulf %10, %19 : vector<32x32xf32>
    %43 = arith.mulf %42, %34 : vector<32x32xf32>
    %44 = arith.addf %41, %43 : vector<32x32xf32>
    %45 = arith.mulf %37, %37 : vector<32x32xf32>
    %46 = arith.subf %44, %45 : vector<32x32xf32>
    %cst_24 = arith.constant 9.99999997E-7 : f32
    %47 = vector.broadcast %cst_24 : f32 to vector<32x32xf32>
    %48 = arith.addf %46, %47 : vector<32x32xf32>
    %cst_25 = arith.constant 9.99999997E-7 : f32
    %49 = vector.broadcast %cst_25 : f32 to vector<32x32xf32>
    %50 = arith.maximumf %48, %49 : vector<32x32xf32>
    %51 = math.sqrt %50 : vector<32x32xf32>
    %cst_26 = arith.constant dense<0.000000e+00> : vector<32x32xf32>
    %52 = tpu.matmul %37, %5, %cst_26 {dimension_numbers = #tpu.dot_dimension_numbers<[1], [0], [0], [1], [0, 0, 1, 1], [], []>} : vector<32x32xf32>, vector<32x32xf32>, vector<32x32xf32> -> vector<32x32xf32>
    %53 = vector.broadcast %7 : vector<1x32xf32> to vector<32x32xf32>
    %54 = arith.addf %52, %53 : vector<32x32xf32>
    %55 = arith.mulf %51, %51 : vector<32x32xf32>
    %cst_27 = arith.constant dense<0.000000e+00> : vector<32x32xf32>
    %56 = tpu.matmul %55, %6, %cst_27 {dimension_numbers = #tpu.dot_dimension_numbers<[1], [0], [0], [1], [0, 0, 1, 1], [], []>} : vector<32x32xf32>, vector<32x32xf32>, vector<32x32xf32> -> vector<32x32xf32>
    %cst_28 = arith.constant 1.000000e-07 : f32
    %57 = vector.broadcast %cst_28 : f32 to vector<32x32xf32>
    %58 = arith.maximumf %56, %57 : vector<32x32xf32>
    %59 = math.sqrt %58 : vector<32x32xf32>
    %c0_29 = arith.constant 0 : index
    %c0_30 = arith.constant 0 : index
    %60 = vector.load %arg10[%c0_29, %c0_30] : memref<32x32xf32, #tpu.memory_space<vmem>>, vector<32x32xf32>
    %c0_31 = arith.constant 0 : index
    %c0_32 = arith.constant 0 : index
    %61 = vector.load %arg11[%c0_31, %c0_32] : memref<32x32xf32, #tpu.memory_space<vmem>>, vector<32x32xf32>
    %c0_33 = arith.constant 0 : index
    %c0_34 = arith.constant 0 : index
    %62 = vector.load %arg12[%c0_33, %c0_34] : memref<1x32xf32, #tpu.memory_space<vmem>>, vector<1x32xf32>
    %c0_35 = arith.constant 0 : index
    %c0_36 = arith.constant 0 : index
    %63 = vector.load %arg13[%c0_35, %c0_36] : memref<32x32xf32, #tpu.memory_space<vmem>>, vector<32x32xf32>
    %c0_37 = arith.constant 0 : index
    %c0_38 = arith.constant 0 : index
    %64 = vector.load %arg14[%c0_37, %c0_38] : memref<32x32xf32, #tpu.memory_space<vmem>>, vector<32x32xf32>
    %c0_39 = arith.constant 0 : index
    %c0_40 = arith.constant 0 : index
    %65 = vector.load %arg15[%c0_39, %c0_40] : memref<1x32xf32, #tpu.memory_space<vmem>>, vector<1x32xf32>
    %cst_41 = arith.constant dense<0.000000e+00> : vector<32x32xf32>
    %66 = tpu.matmul %54, %60, %cst_41 {dimension_numbers = #tpu.dot_dimension_numbers<[1], [0], [0], [1], [0, 0, 1, 1], [], []>} : vector<32x32xf32>, vector<32x32xf32>, vector<32x32xf32> -> vector<32x32xf32>
    %67 = vector.broadcast %62 : vector<1x32xf32> to vector<32x32xf32>
    %68 = arith.addf %66, %67 : vector<32x32xf32>
    %69 = arith.mulf %59, %59 : vector<32x32xf32>
    %cst_42 = arith.constant dense<0.000000e+00> : vector<32x32xf32>
    %70 = tpu.matmul %69, %61, %cst_42 {dimension_numbers = #tpu.dot_dimension_numbers<[1], [0], [0], [1], [0, 0, 1, 1], [], []>} : vector<32x32xf32>, vector<32x32xf32>, vector<32x32xf32> -> vector<32x32xf32>
    %cst_43 = arith.constant 1.000000e-07 : f32
    %71 = vector.broadcast %cst_43 : f32 to vector<32x32xf32>
    %72 = arith.maximumf %70, %71 : vector<32x32xf32>
    %73 = math.sqrt %72 : vector<32x32xf32>
    %cst_44 = arith.constant 9.99999997E-7 : f32
    %74 = vector.broadcast %cst_44 : f32 to vector<32x32xf32>
    %75 = arith.addf %73, %74 : vector<32x32xf32>
    %cst_45 = arith.constant 9.99999997E-7 : f32
    %76 = vector.broadcast %cst_45 : f32 to vector<32x32xf32>
    %77 = arith.maximumf %75, %76 : vector<32x32xf32>
    %78 = tpu.reciprocal %77 {approx = true} : vector<32x32xf32> -> vector<32x32xf32>
    %79 = arith.mulf %68, %78 : vector<32x32xf32>
    %cst_46 = arith.constant 0.707106769 : f32
    %80 = vector.broadcast %cst_46 : f32 to vector<32x32xf32>
    %81 = arith.mulf %79, %80 : vector<32x32xf32>
    %82 = math.erf %81 : vector<32x32xf32>
    %cst_47 = arith.constant 1.000000e+00 : f32
    %83 = vector.broadcast %cst_47 : f32 to vector<32x32xf32>
    %84 = arith.addf %83, %82 : vector<32x32xf32>
    %cst_48 = arith.constant 5.000000e-01 : f32
    %85 = vector.broadcast %cst_48 : f32 to vector<32x32xf32>
    %86 = arith.mulf %85, %84 : vector<32x32xf32>
    %cst_49 = arith.constant -5.000000e-01 : f32
    %87 = vector.broadcast %cst_49 : f32 to vector<32x32xf32>
    %88 = arith.mulf %87, %79 : vector<32x32xf32>
    %89 = arith.mulf %88, %79 : vector<32x32xf32>
    %90 = math.exp %89 : vector<32x32xf32>
    %cst_50 = arith.constant 0.398942292 : f32
    %91 = vector.broadcast %cst_50 : f32 to vector<32x32xf32>
    %92 = arith.mulf %90, %91 : vector<32x32xf32>
    %93 = arith.mulf %68, %86 : vector<32x32xf32>
    %94 = arith.mulf %77, %92 : vector<32x32xf32>
    %95 = arith.addf %93, %94 : vector<32x32xf32>
    %96 = arith.mulf %68, %68 : vector<32x32xf32>
    %97 = arith.mulf %77, %77 : vector<32x32xf32>
    %98 = arith.addf %96, %97 : vector<32x32xf32>
    %99 = arith.mulf %98, %86 : vector<32x32xf32>
    %100 = arith.mulf %68, %77 : vector<32x32xf32>
    %101 = arith.mulf %100, %92 : vector<32x32xf32>
    %102 = arith.addf %99, %101 : vector<32x32xf32>
    %103 = arith.mulf %95, %95 : vector<32x32xf32>
    %104 = arith.subf %102, %103 : vector<32x32xf32>
    %cst_51 = arith.constant 9.99999997E-7 : f32
    %105 = vector.broadcast %cst_51 : f32 to vector<32x32xf32>
    %106 = arith.addf %104, %105 : vector<32x32xf32>
    %cst_52 = arith.constant 9.99999997E-7 : f32
    %107 = vector.broadcast %cst_52 : f32 to vector<32x32xf32>
    %108 = arith.maximumf %106, %107 : vector<32x32xf32>
    %109 = math.sqrt %108 : vector<32x32xf32>
    %cst_53 = arith.constant dense<0.000000e+00> : vector<32x32xf32>
    %110 = tpu.matmul %95, %63, %cst_53 {dimension_numbers = #tpu.dot_dimension_numbers<[1], [0], [0], [1], [0, 0, 1, 1], [], []>} : vector<32x32xf32>, vector<32x32xf32>, vector<32x32xf32> -> vector<32x32xf32>
    %111 = vector.broadcast %65 : vector<1x32xf32> to vector<32x32xf32>
    %112 = arith.addf %110, %111 : vector<32x32xf32>
    %113 = arith.mulf %109, %109 : vector<32x32xf32>
    %cst_54 = arith.constant dense<0.000000e+00> : vector<32x32xf32>
    %114 = tpu.matmul %113, %64, %cst_54 {dimension_numbers = #tpu.dot_dimension_numbers<[1], [0], [0], [1], [0, 0, 1, 1], [], []>} : vector<32x32xf32>, vector<32x32xf32>, vector<32x32xf32> -> vector<32x32xf32>
    %cst_55 = arith.constant 1.000000e-07 : f32
    %115 = vector.broadcast %cst_55 : f32 to vector<32x32xf32>
    %116 = arith.maximumf %114, %115 : vector<32x32xf32>
    %117 = math.sqrt %116 : vector<32x32xf32>
    %c0_56 = arith.constant 0 : index
    %c0_57 = arith.constant 0 : index
    %118 = vector.load %arg16[%c0_56, %c0_57] : memref<32x32xf32, #tpu.memory_space<vmem>>, vector<32x32xf32>
    %c0_58 = arith.constant 0 : index
    %c0_59 = arith.constant 0 : index
    %119 = vector.load %arg17[%c0_58, %c0_59] : memref<32x32xf32, #tpu.memory_space<vmem>>, vector<32x32xf32>
    %c0_60 = arith.constant 0 : index
    %c0_61 = arith.constant 0 : index
    %120 = vector.load %arg18[%c0_60, %c0_61] : memref<1x32xf32, #tpu.memory_space<vmem>>, vector<1x32xf32>
    %c0_62 = arith.constant 0 : index
    %c0_63 = arith.constant 0 : index
    %121 = vector.load %arg19[%c0_62, %c0_63] : memref<32x32xf32, #tpu.memory_space<vmem>>, vector<32x32xf32>
    %c0_64 = arith.constant 0 : index
    %c0_65 = arith.constant 0 : index
    %122 = vector.load %arg21[%c0_64, %c0_65] : memref<1x32xf32, #tpu.memory_space<vmem>>, vector<1x32xf32>
    %cst_66 = arith.constant dense<0.000000e+00> : vector<32x32xf32>
    %123 = tpu.matmul %112, %118, %cst_66 {dimension_numbers = #tpu.dot_dimension_numbers<[1], [0], [0], [1], [0, 0, 1, 1], [], []>} : vector<32x32xf32>, vector<32x32xf32>, vector<32x32xf32> -> vector<32x32xf32>
    %124 = vector.broadcast %120 : vector<1x32xf32> to vector<32x32xf32>
    %125 = arith.addf %123, %124 : vector<32x32xf32>
    %126 = arith.mulf %117, %117 : vector<32x32xf32>
    %cst_67 = arith.constant dense<0.000000e+00> : vector<32x32xf32>
    %127 = tpu.matmul %126, %119, %cst_67 {dimension_numbers = #tpu.dot_dimension_numbers<[1], [0], [0], [1], [0, 0, 1, 1], [], []>} : vector<32x32xf32>, vector<32x32xf32>, vector<32x32xf32> -> vector<32x32xf32>
    %cst_68 = arith.constant 1.000000e-07 : f32
    %128 = vector.broadcast %cst_68 : f32 to vector<32x32xf32>
    %129 = arith.maximumf %127, %128 : vector<32x32xf32>
    %130 = math.sqrt %129 : vector<32x32xf32>
    %cst_69 = arith.constant 9.99999997E-7 : f32
    %131 = vector.broadcast %cst_69 : f32 to vector<32x32xf32>
    %132 = arith.addf %130, %131 : vector<32x32xf32>
    %cst_70 = arith.constant 9.99999997E-7 : f32
    %133 = vector.broadcast %cst_70 : f32 to vector<32x32xf32>
    %134 = arith.maximumf %132, %133 : vector<32x32xf32>
    %135 = tpu.reciprocal %134 {approx = true} : vector<32x32xf32> -> vector<32x32xf32>
    %136 = arith.mulf %125, %135 : vector<32x32xf32>
    %cst_71 = arith.constant 0.707106769 : f32
    %137 = vector.broadcast %cst_71 : f32 to vector<32x32xf32>
    %138 = arith.mulf %136, %137 : vector<32x32xf32>
    %139 = math.erf %138 : vector<32x32xf32>
    %cst_72 = arith.constant 1.000000e+00 : f32
    %140 = vector.broadcast %cst_72 : f32 to vector<32x32xf32>
    %141 = arith.addf %140, %139 : vector<32x32xf32>
    %cst_73 = arith.constant 5.000000e-01 : f32
    %142 = vector.broadcast %cst_73 : f32 to vector<32x32xf32>
    %143 = arith.mulf %142, %141 : vector<32x32xf32>
    %cst_74 = arith.constant -5.000000e-01 : f32
    %144 = vector.broadcast %cst_74 : f32 to vector<32x32xf32>
    %145 = arith.mulf %144, %136 : vector<32x32xf32>
    %146 = arith.mulf %145, %136 : vector<32x32xf32>
    %147 = math.exp %146 : vector<32x32xf32>
    %cst_75 = arith.constant 0.398942292 : f32
    %148 = vector.broadcast %cst_75 : f32 to vector<32x32xf32>
    %149 = arith.mulf %147, %148 : vector<32x32xf32>
    %150 = arith.mulf %125, %143 : vector<32x32xf32>
    %151 = arith.mulf %134, %149 : vector<32x32xf32>
    %152 = arith.addf %150, %151 : vector<32x32xf32>
    %cst_76 = arith.constant dense<0.000000e+00> : vector<32x32xf32>
    %153 = tpu.matmul %152, %121, %cst_76 {dimension_numbers = #tpu.dot_dimension_numbers<[1], [0], [0], [1], [0, 0, 1, 1], [], []>} : vector<32x32xf32>, vector<32x32xf32>, vector<32x32xf32> -> vector<32x32xf32>
    %154 = vector.broadcast %122 : vector<1x32xf32> to vector<32x32xf32>
    %155 = arith.addf %153, %154 : vector<32x32xf32>
    %c0_77 = arith.constant 0 : index
    %c0_78 = arith.constant 0 : index
    %156 = vector.load %arg3[%c0_77, %c0_78] : memref<2x32xf32, #tpu.memory_space<vmem>>, vector<2x32xf32>
    %cst_79 = arith.constant dense<0.000000e+00> : vector<2x32xf32>
    %157 = tpu.matmul %156, %155, %cst_79 {dimension_numbers = #tpu.dot_dimension_numbers<[1], [0], [0], [1], [0, 0, 1, 1], [], []>} : vector<2x32xf32>, vector<32x32xf32>, vector<2x32xf32> -> vector<2x32xf32>
    %cst_80 = arith.constant 6.250000e-02 : f32
    %158 = vector.broadcast %cst_80 : f32 to vector<2x32xf32>
    %159 = arith.mulf %157, %158 : vector<2x32xf32>
    %c0_81 = arith.constant 0 : index
    %c0_82 = arith.constant 0 : index
    %160 = vector.load %arg22[%c0_81, %c0_82] : memref<32x1xf32, #tpu.memory_space<vmem>>, vector<32x1xf32>
    %c0_83 = arith.constant 0 : index
    %c0_84 = arith.constant 0 : index
    %161 = vector.load %arg24[%c0_83, %c0_84] : memref<1x1xf32, #tpu.memory_space<vmem>>, vector<1x1xf32>
    %cst_85 = arith.constant dense<0.000000e+00> : vector<2x1xf32>
    %162 = tpu.matmul %159, %160, %cst_85 {dimension_numbers = #tpu.dot_dimension_numbers<[1], [0], [0], [1], [0, 0, 1, 1], [], []>} : vector<2x32xf32>, vector<32x1xf32>, vector<2x1xf32> -> vector<2x1xf32>
    %163 = vector.broadcast %161 : vector<1x1xf32> to vector<2x1xf32>
    %164 = arith.addf %162, %163 : vector<2x1xf32>
    %c0_86 = arith.constant 0 : index
    %c0_87 = arith.constant 0 : index
    %165 = vector.load %arg25[%c0_86, %c0_87] : memref<2x1xf32, #tpu.memory_space<vmem>>, vector<2x1xf32>
    tpu.vector_store %arg25[%c0_86, %c0_87], %164 {strides = array<i32>} : memref<2x1xf32, #tpu.memory_space<vmem>>, vector<2x1xf32>,
    return
  }
  func.func @transform_0(%arg0: i32) -> (i32, i32) {
    %c0_i32 = arith.constant 0 : i32
    %c0_i32_0 = arith.constant 0 : i32
    %c0_i32_1 = arith.constant 0 : i32
    return %c0_i32, %c0_i32_0 : i32, i32
  }
  func.func @transform_1(%arg0: i32) -> (i32, i32) {
    %c0_i32 = arith.constant 0 : i32
    %c0_i32_0 = arith.constant 0 : i32
    %c0_i32_1 = arith.constant 0 : i32
    return %c0_i32, %c0_i32_0 : i32, i32
  }
  func.func @transform_2(%arg0: i32) -> (i32, i32) {
    %c0_i32 = arith.constant 0 : i32
    %c0_i32_0 = arith.constant 0 : i32
    %c0_i32_1 = arith.constant 0 : i32
    return %c0_i32, %c0_i32_0 : i32, i32
  }
  func.func @transform_3(%arg0: i32) -> (i32, i32) {
    %c0_i32 = arith.constant 0 : i32
    %c0_i32_0 = arith.constant 0 : i32
    %c0_i32_1 = arith.constant 0 : i32
    return %c0_i32, %c0_i32_0 : i32, i32
  }
  func.func @transform_4(%arg0: i32) -> (i32, i32) {
    %c0_i32 = arith.constant 0 : i32
    %c0_i32_0 = arith.constant 0 : i32
    %c0_i32_1 = arith.constant 0 : i32
    return %c0_i32, %c0_i32_0 : i32, i32
  }
  func.func @transform_5(%arg0: i32) -> (i32, i32) {
    %c0_i32 = arith.constant 0 : i32
    %c0_i32_0 = arith.constant 0 : i32
    %c0_i32_1 = arith.constant 0 : i32
    return %c0_i32, %c0_i32_0 : i32, i32
  }
  func.func @transform_6(%arg0: i32) -> (i32, i32) {
    %c0_i32 = arith.constant 0 : i32
    %c0_i32_0 = arith.constant 0 : i32
    %c0_i32_1 = arith.constant 0 : i32
    return %c0_i32, %c0_i32_0 : i32, i32
  }
  func.func @transform_7(%arg0: i32) -> (i32, i32) {
    %c0_i32 = arith.constant 0 : i32
    %c0_i32_0 = arith.constant 0 : i32
    %c0_i32_1 = arith.constant 0 : i32
    return %c0_i32, %c0_i32_0 : i32, i32
  }
  func.func @transform_8(%arg0: i32) -> (i32, i32) {
    %c0_i32 = arith.constant 0 : i32
    %c0_i32_0 = arith.constant 0 : i32
    %c0_i32_1 = arith.constant 0 : i32
    return %c0_i32, %c0_i32_0 : i32, i32
  }
  func.func @transform_9(%arg0: i32) -> (i32, i32) {
    %c0_i32 = arith.constant 0 : i32
    %c0_i32_0 = arith.constant 0 : i32
    %c0_i32_1 = arith.constant 0 : i32
    return %c0_i32, %c0_i32_0 : i32, i32
  }
  func.func @transform_10(%arg0: i32) -> (i32, i32) {
    %c0_i32 = arith.constant 0 : i32
    %c0_i32_0 = arith.constant 0 : i32
    %c0_i32_1 = arith.constant 0 : i32
    return %c0_i32, %c0_i32_0 : i32, i32
  }
  func.func @transform_11(%arg0: i32) -> (i32, i32) {
    %c0_i32 = arith.constant 0 : i32
    %c0_i32_0 = arith.constant 0 : i32
    %c0_i32_1 = arith.constant 0 : i32
    return %c0_i32, %c0_i32_0 : i32, i32
  }
  func.func @transform_12(%arg0: i32) -> (i32, i32) {
    %c0_i32 = arith.constant 0 : i32
    %c0_i32_0 = arith.constant 0 : i32
    %c0_i32_1 = arith.constant 0 : i32
    return %c0_i32, %c0_i32_0 : i32, i32
  }
  func.func @transform_13(%arg0: i32) -> (i32, i32) {
    %c0_i32 = arith.constant 0 : i32
    %c0_i32_0 = arith.constant 0 : i32
    %c0_i32_1 = arith.constant 0 : i32
    return %c0_i32, %c0_i32_0 : i32, i32
  }
  func.func @transform_14(%arg0: i32) -> (i32, i32) {
    %c0_i32 = arith.constant 0 : i32
    %c0_i32_0 = arith.constant 0 : i32
    %c0_i32_1 = arith.constant 0 : i32
    return %c0_i32, %c0_i32_0 : i32, i32
  }
  func.func @transform_15(%arg0: i32) -> (i32, i32) {
    %c0_i32 = arith.constant 0 : i32
    %c0_i32_0 = arith.constant 0 : i32
    %c0_i32_1 = arith.constant 0 : i32
    return %c0_i32, %c0_i32_0 : i32, i32
  }
  func.func @transform_16(%arg0: i32) -> (i32, i32) {
    %c0_i32 = arith.constant 0 : i32
    %c0_i32_0 = arith.constant 0 : i32
    %c0_i32_1 = arith.constant 0 : i32
    return %c0_i32, %c0_i32_0 : i32, i32
  }
  func.func @transform_17(%arg0: i32) -> (i32, i32) {
    %c0_i32 = arith.constant 0 : i32
    %c0_i32_0 = arith.constant 0 : i32
    %c0_i32_1 = arith.constant 0 : i32
    return %c0_i32, %c0_i32_0 : i32, i32
  }
  func.func @transform_18(%arg0: i32) -> (i32, i32) {
    %c0_i32 = arith.constant 0 : i32
    %c0_i32_0 = arith.constant 0 : i32
    %c0_i32_1 = arith.constant 0 : i32
    return %c0_i32, %c0_i32_0 : i32, i32
  }
  func.func @transform_19(%arg0: i32) -> (i32, i32) {
    %c0_i32 = arith.constant 0 : i32
    %c0_i32_0 = arith.constant 0 : i32
    %c0_i32_1 = arith.constant 0 : i32
    return %c0_i32, %c0_i32_0 : i32, i32
  }
  func.func @transform_20(%arg0: i32) -> (i32, i32) {
    %c0_i32 = arith.constant 0 : i32
    %c0_i32_0 = arith.constant 0 : i32
    %c0_i32_1 = arith.constant 0 : i32
    return %c0_i32, %c0_i32_0 : i32, i32
  }
  func.func @transform_21(%arg0: i32) -> (i32, i32) {
    %c0_i32 = arith.constant 0 : i32
    %c0_i32_0 = arith.constant 0 : i32
    %c0_i32_1 = arith.constant 0 : i32
    return %c0_i32, %c0_i32_0 : i32, i32
  }
  func.func @transform_22(%arg0: i32) -> (i32, i32) {
    %c0_i32 = arith.constant 0 : i32
    %c0_i32_0 = arith.constant 0 : i32
    %c0_i32_1 = arith.constant 0 : i32
    return %c0_i32, %c0_i32_0 : i32, i32
  }
  func.func @transform_23(%arg0: i32) -> (i32, i32) {
    %c0_i32 = arith.constant 0 : i32
    %c0_i32_0 = arith.constant 0 : i32
    %c0_i32_1 = arith.constant 0 : i32
    return %c0_i32, %c0_i32_0 : i32, i32
  }
  func.func @transform_24(%arg0: i32) -> (i32, i32) {
    %c0_i32 = arith.constant 0 : i32
    %c0_i32_0 = arith.constant 0 : i32
    %c0_i32_1 = arith.constant 0 : i32
    return %c0_i32, %c0_i32_0 : i32, i32
  }
}

</mosaic_0001>

<bundles_post_ra>
// kernel: physio_pncnn_simple_forward.1
= control target key start
LH: loop header
LB: loop body
LE: loop exit
PB: predicated region body
PF: predicated region fallthrough
CT: control target
= control target key end

     0   :  { %s3202_s0 = inlined_call_operand.vmem [shape: f32[32,9], index: 0, kind: input, shape index: {}]   ;;  %s3203_s1 = inlined_call_operand.vmem [shape: f32[32,9], index: 1, kind: input, shape index: {}]   ;;  %s3204_s2 = inlined_call_operand.vmem [shape: f32[2,32], index: 2, kind: input, shape index: {}]   ;;  %s3205_s3 = inlined_call_operand.vmem [shape: f32[9,32], index: 3, kind: input, shape index: {}]   ;;  %s3206_s4 = inlined_call_operand.hbm [shape: f32[9,32], index: 4, kind: input, shape index: {}]   ;;  %s3207_s5 = inlined_call_operand.vmem [shape: f32[1,32], index: 5, kind: input, shape index: {}]   ;;  %s3208_s6 = inlined_call_operand.vmem [shape: f32[32,32], index: 6, kind: input, shape index: {}]   ;;  %s3209_s7 = inlined_call_operand.vmem [shape: f32[32,32], index: 7, kind: input, shape index: {}]   ;;  %s3210_s8 = inlined_call_operand.vmem [shape: f32[1,32], index: 8, kind: input, shape index: {}]   ;;  %s3211_s9 = inlined_call_operand.vmem [shape: f32[32,32], index: 9, kind: input, shape index: {}]   ;;  %s3212_s10 = inlined_call_operand.vmem [shape: f32[32,32], index: 10, kind: input, shape index: {}]   ;;  %s3213_s11 = inlined_call_operand.hbm [shape: f32[1,32], index: 11, kind: input, shape index: {}]   ;;  %s3214_s12 = inlined_call_operand.vmem [shape: f32[32,32], index: 12, kind: input, shape index: {}]   ;;  %s3215_s13 = inlined_call_operand.vmem [shape: f32[32,32], index: 13, kind: input, shape index: {}]   ;;  %s3216_s14 = inlined_call_operand.hbm [shape: f32[1,32], index: 14, kind: input, shape index: {}]   ;;  %s3217_s15 = inlined_call_operand.vmem [shape: f32[32,32], index: 15, kind: input, shape index: {}]   ;;  %s3218_s16 = inlined_call_operand.vmem [shape: f32[32,32], index: 16, kind: input, shape index: {}]   ;;  %s3219_s17 = inlined_call_operand.hbm [shape: f32[1,32], index: 17, kind: input, shape index: {}]   ;;  %s3220_s18 = inlined_call_operand.hbm [shape: f32[32,32], index: 18, kind: input, shape index: {}]   ;;  %s3221_s19 = inlined_call_operand.hbm [shape: f32[32,32], index: 19, kind: input, shape index: {}]   ;;  %s3222_s20 = inlined_call_operand.hbm [shape: f32[1,32], index: 20, kind: input, shape index: {}]   ;;  %s3223_s21 = inlined_call_operand.hbm [shape: f32[32,1], index: 21, kind: input, shape index: {}]   ;;  %s3224_s22 = inlined_call_operand.hbm [shape: f32[32,1], index: 22, kind: input, shape index: {}]   ;;  %s3225_s23 = inlined_call_operand.<no memory space> [shape: f32[1,1], index: 23, kind: input, shape index: {}]   ;;  %s3226_s24 = inlined_call_operand.vmem [shape: f32[2,1], index: 24, kind: output, shape index: {}]  }
   0x1   :  { %3232 = sst [smem:[#allocation22_spill]] %s3202_s0  ;;  %v29_v0 = vstv %s3225_s23 }
   0x2   :  { %3233 = sst [smem:[#allocation23_spill]] %s3203_s1  ;;  %30 = vst [vmem:[#allocation2] sm:$0x1] %v29_v0 }
   0x3   :  { %3234 = sst [smem:[#allocation24_spill]] %s3204_s2 }
   0x4   :  { %3235 = sst [smem:[#allocation25_spill]] %s3205_s3 }
   0x5   :  { %3236 = sst [smem:[#allocation26_spill]] %s3206_s4 }
   0x6   :  { %3237 = sst [smem:[#allocation27_spill]] %s3207_s5 }
   0x7   :  { %3238 = sst [smem:[#allocation28_spill]] %s3208_s6 }
   0x8   :  { %3239 = sst [smem:[#allocation29_spill]] %s3209_s7 }
   0x9   :  { %3240 = sst [smem:[#allocation30_spill]] %s3210_s8 }
   0xa   :  { %31 = vsyncpa [#allocation4], 0 }
   0xb   :  { %32 = vsyncpa [#allocation6], 0 }
   0xc   :  { %33 = vsyncpa [#allocation9], 0 }
   0xd   :  { %34 = vsyncpa [#allocation12], 0 }
   0xe   :  { %35 = vsyncpa [#allocation15], 0  ;;  %s2693_s27 = smov [#allocation5]   ;;  %s2694_s6 = smov [#allocation8]  }
   0xf   :  { %s74_s28 = sshll.u32 %s2693_s27, 4  ;;  %s102_s2 = sshll.u32 %s2694_s6, 4  ;;  %s75_s28 = int_to_ptr.vmem [resolvable:$true] %s74_s28  ;;  %s103_s2 = int_to_ptr.vmem [resolvable:$true] %s102_s2 }
  0x10   :  { %s2511_s29 = scalar_lea.vmem %s75_s28, 16  ;;  %s2515_s0 = scalar_lea.vmem %s75_s28, 32 }
  0x11   :  { %p2512_p0 = scmp.ne.s32.totalorder %s75_s28, %s2511_s29  ;;  %p2516_p1 = scmp.lt.s32.totalorder %s75_s28, %s75_s28 }
  0x12   :  { %p2517_p2 = scmp.lt.s32.totalorder %s2515_s0, %s2511_s29 }
  0x14   :  { %p2518_p3 = por %p2517_p2, %p2516_p1 }
  0x16   :  { %p2519_p4 = pnand %p2518_p3, %p2512_p0 }
  0x18   :  { %2522 = shalt.err (!%p2519_p4)
}
  0x19   :  { %77 = dma.hbm_to_vmem [thread:$0]  %s3213_s11, 16, %s75_s28, [#allocation6]  }
  0x1a   :  { %s2531_s30 = scalar_lea.vmem %s103_s2, 16  ;;  %s2535_s3 = scalar_lea.vmem %s103_s2, 32 }
  0x1b   :  { %p2532_p5 = scmp.ne.s32.totalorder %s103_s2, %s2531_s30  ;;  %p2536_p6 = scmp.lt.s32.totalorder %s103_s2, %s103_s2 }
  0x1c   :  { %p2537_p7 = scmp.lt.s32.totalorder %s2535_s3, %s2531_s30 }
  0x1e   :  { %p2538_p8 = por %p2537_p7, %p2536_p6 }
  0x20   :  { %p2539_p9 = pnand %p2538_p8, %p2532_p5 }
  0x22   :  { %2542 = shalt.err (!%p2539_p9)
}
  0x23   :  { %105 = dma.hbm_to_vmem [thread:$0]  %s3219_s17, 16, %s103_s2, [#allocation9]  }
  0x24   :  { %s2695_s4 = smov [#allocation11]   ;;  %s2696_s5 = smov [#allocation14]  }
  0x25   :  { %s123_s1 = sshll.u32 %s2695_s4, 4  ;;  %s145_s26 = sshll.u32 %s2696_s5, 4  ;;  %s124_s1 = int_to_ptr.vmem [resolvable:$true] %s123_s1  ;;  %s146_s26 = int_to_ptr.vmem [resolvable:$true] %s145_s26 }
  0x26   :  { %s2551_s27 = scalar_lea.vmem %s124_s1, 512  ;;  %p2556_p11 = scmp.lt.s32.totalorder %s124_s1, %s124_s1 }
  0x27   :  { %p2552_p10 = scmp.ne.s32.totalorder %s124_s1, %s2551_s27  ;;  %p2557_p12 = scmp.lt.s32.totalorder %s2551_s27, %s2551_s27 }
  0x29   :  { %p2558_p13 = por %p2557_p12, %p2556_p11 }
  0x2b   :  { %p2559_p0 = pnand %p2558_p13, %p2552_p10 }
  0x2d   :  { %2562 = shalt.err (!%p2559_p0)
}
  0x2e   :  { %s2697_s11 = smov 128   ;;  %s2698_s28 = smov 8  }
  0x2f   :  { %129 = dma.hbm_to_vmem [thread:$0]  %s3221_s19, 512, %s124_s1, [#allocation12], %s2697_s11, %s2697_s11, %s2698_s28  }
  0x30   :  { %s2571_s2 = scalar_lea.vmem %s146_s26, 512  ;;  %p2576_p2 = scmp.lt.s32.totalorder %s146_s26, %s146_s26 }
  0x31   :  { %p2572_p1 = scmp.ne.s32.totalorder %s146_s26, %s2571_s2  ;;  %p2577_p3 = scmp.lt.s32.totalorder %s2571_s2, %s2571_s2 }
  0x33   :  { %p2578_p4 = por %p2577_p3, %p2576_p2 }
  0x35   :  { %p2579_p5 = pnand %p2578_p4, %p2572_p1 }
  0x37   :  { %2582 = shalt.err (!%p2579_p5)
}
  0x38   :  { %151 = dma.hbm_to_vmem [thread:$0]  %s3223_s21, 512, %s146_s26, [#allocation15], %s2697_s11, %s2697_s11, %s2698_s28  }
  0x39   :  { %s2699_s23 = smov [#allocation3]   ;;  %s2700_s30 = smov [#allocation7]  }
  0x3a   :  { %s49_s7 = sshll.u32 %s2699_s23, 4  ;;  %s88_s3 = sshll.u32 %s2700_s30, 4  ;;  %s50_s7 = int_to_ptr.vmem [resolvable:$true] %s49_s7  ;;  %s89_s3 = int_to_ptr.vmem [resolvable:$true] %s88_s3 }
  0x3b   :  { %s2591_s19 = scalar_lea.vmem %s50_s7, 256  ;;  %p2596_p7 = scmp.lt.s32.totalorder %s50_s7, %s50_s7 }
  0x3c   :  { %p2592_p6 = scmp.ne.s32.totalorder %s50_s7, %s2591_s19  ;;  %p2597_p8 = scmp.lt.s32.totalorder %s2591_s19, %s2591_s19 }
  0x3e   :  { %p2598_p9 = por %p2597_p8, %p2596_p7 }
  0x40   :  { %p2599_p10 = pnand %p2598_p9, %p2592_p6 }
  0x42   :  { %2602 = shalt.err (!%p2599_p10)
}
  0x43   :  { %s3241_s4 = sld [smem:[#allocation26_spill]]  ;;  %s2611_s21 = scalar_lea.vmem %s89_s3, 16 }
  0x44   :  { %p2612_p11 = scmp.ne.s32.totalorder %s89_s3, %s2611_s21  ;;  %s2615_s1 = scalar_lea.vmem %s89_s3, 32 }
  0x45   :  { %p2616_p12 = scmp.lt.s32.totalorder %s89_s3, %s89_s3  ;;  %p2617_p13 = scmp.lt.s32.totalorder %s2615_s1, %s2611_s21 }
  0x47   :  { %p2618_p0 = por %p2617_p13, %p2616_p12 }
  0x49   :  { %55 = dma.hbm_to_vmem [thread:$0]  %s3241_s4, 256, %s50_s7, [#allocation4], %s2697_s11, %s2697_s11, %s2698_s28  }
  0x4a   :  { %p2619_p1 = pnand %p2618_p0, %p2612_p11 }
  0x4c   :  { %2622 = shalt.err (!%p2619_p1)
}
  0x4d   :  { %91 = dma.hbm_to_vmem [thread:$0]  %s3216_s14, 16, %s89_s3, [#allocation6]  }
  0x4e   :  { %s2701_s27 = smov [#allocation10]   ;;  %s2702_s17 = smov [#allocation13]  }
  0x4f   :  { %s111_s6 = sshll.u32 %s2701_s27, 4  ;;  %s136_s2 = sshll.u32 %s2702_s17, 4  ;;  %s112_s6 = int_to_ptr.vmem [resolvable:$true] %s111_s6  ;;  %s137_s2 = int_to_ptr.vmem [resolvable:$true] %s136_s2 }
  0x50   :  { %s2631_s29 = scalar_lea.vmem %s112_s6, 512  ;;  %p2636_p3 = scmp.lt.s32.totalorder %s112_s6, %s112_s6 }
  0x51   :  { %p2632_p2 = scmp.ne.s32.totalorder %s112_s6, %s2631_s29  ;;  %p2637_p4 = scmp.lt.s32.totalorder %s2631_s29, %s2631_s29 }
  0x53   :  { %p2638_p5 = por %p2637_p4, %p2636_p3 }
  0x55   :  { %p2639_p6 = pnand %p2638_p5, %p2632_p2 }
  0x57   :  { %2642 = shalt.err (!%p2639_p6)
}
  0x58   :  { %117 = dma.hbm_to_vmem [thread:$0]  %s3220_s18, 512, %s112_s6, [#allocation9], %s2697_s11, %s2697_s11, %s2698_s28  }
  0x59   :  { %s2651_s14 = scalar_lea.vmem %s137_s2, 16  ;;  %s2655_s7 = scalar_lea.vmem %s137_s2, 32 }
  0x5a   :  { %p2652_p7 = scmp.ne.s32.totalorder %s137_s2, %s2651_s14  ;;  %p2656_p8 = scmp.lt.s32.totalorder %s137_s2, %s137_s2 }
  0x5b   :  { %p2657_p9 = scmp.lt.s32.totalorder %s2655_s7, %s2651_s14 }
  0x5d   :  { %p2658_p10 = por %p2657_p9, %p2656_p8 }
  0x5f   :  { %p2659_p11 = pnand %p2658_p10, %p2652_p7 }
  0x61   :  { %2662 = shalt.err (!%p2659_p11)
}
  0x62   :  { %139 = dma.hbm_to_vmem [thread:$0]  %s3222_s20, 16, %s137_s2, [#allocation12]  }
  0x63   :  { %s2703_s19 = smov [#allocation16]  }
  0x64   :  { %s157_s25 = sshll.u32 %s2703_s19, 4  ;;  %s158_s25 = int_to_ptr.vmem [resolvable:$true] %s157_s25 }
  0x65   :  { %s2671_s8 = scalar_lea.vmem %s158_s25, 512  ;;  %p2676_p13 = scmp.lt.s32.totalorder %s158_s25, %s158_s25 }
  0x66   :  { %p2672_p12 = scmp.ne.s32.totalorder %s158_s25, %s2671_s8  ;;  %p2677_p0 = scmp.lt.s32.totalorder %s2671_s8, %s2671_s8 }
  0x68   :  { %p2678_p1 = por %p2677_p0, %p2676_p13 }
  0x6a   :  { %p2679_p2 = pnand %p2678_p1, %p2672_p12 }
  0x6c   :  { %2682 = shalt.err (!%p2679_p2)
}
  0x6d   :  { %163 = dma.hbm_to_vmem [thread:$0]  %s3224_s22, 512, %s158_s25, [#allocation15], %s2697_s11, %s2697_s11, %s2698_s28  }
  0x6e   :  { %2683 = dma.done.wait [#allocation4], 256  }
  0x6f   :  { %2684 = vsyncadd [#allocation4], 4294967040 }
  0x70   :  { %2685 = dma.done.wait [#allocation6], 32  }
  0x71   :  { %2686 = vsyncadd [#allocation6], 4294967264 }
  0x72   :  { %2687 = dma.done.wait [#allocation9], 528  }
  0x73   :  { %2688 = vsyncadd [#allocation9], 4294966768 }
  0x74   :  { %2689 = dma.done.wait [#allocation12], 528  }
  0x75   :  { %2690 = vsyncadd [#allocation12], 4294966768 }
  0x76   :  { %2691 = dma.done.wait [#allocation15], 1024  }
  0x77   :  { %2692 = vsyncadd [#allocation15], 4294966272  ;;  %vm234_vm0 = vcmask 1040384   ;;  %v204_v1 = vld [vmem:[#allocation3 + $0x8] sm:$0x1]  ;;  %v203_v2 = vld [vmem:[#allocation3] sm:$0xff] }
  0x78   :  { %s3242_s1 = sld [smem:[#allocation23_spill]]  ;;  %vm221_vm1 = vcmask 72704   ;;  %2204 = vmatprep.subr.msk.mxu1 %vm234_vm0, %v204_v1  ;;  %v2945_v25 = vld [vmem:[%s3211_s9 + $0x18] sm:$0xff]  ;;  %vm601_vm10 = vcmask 261120  }
  0x79   :  { %2205 = vmatpush3.msk.msra.mxu1 %vm234_vm0, %v204_v1  ;;  %s3243_s2 = sld [smem:[#allocation25_spill]] }
  0x7a   :  { %2206 = vmatprep.subr.mxu1 %v203_v2  ;;  %s3244_s7 = sld [smem:[#allocation22_spill]] }
  0x7b   :  { %2207 = vmatpush3.msra.mxu1 %v203_v2  ;;  %s3245_s21 = sld [smem:[#allocation28_spill]] }
  0x7c   :  { %s3246_s17 = sld [smem:[#allocation29_spill]] }
  0x7d   :  { %s3247_s8 = sld [smem:[#allocation27_spill]] }
  0x7e   :  { %v197_v3 = vld [vmem:[%s3242_s1] sm:$0xff]  ;;  %v198_v5 = vld [vmem:[%s3242_s1 + $0x8] sm:$0xff]  ;;  %v199_v6 = vld [vmem:[%s3242_s1 + $0x10] sm:$0xff]  ;;  %s3248_s0 = sld [smem:[#allocation30_spill]] }
  0x7f   :  { %v323_v4 = vmul.f32 %v197_v3, %v197_v3  ;;  %v324_v7 = vmul.f32 %v198_v5, %v198_v5  ;;  %v325_v8 = vmul.f32 %v199_v6, %v199_v6  ;;  %v200_v9 = vld [vmem:[%s3242_s1 + $0x18] sm:$0xff]  ;;  %v202_v10 = vld [vmem:[%s3243_s2 + $0x8] sm:$0x1]  ;;  %v201_v11 = vld [vmem:[%s3243_s2] sm:$0xff]  ;;  %s3249_s30 = sld [smem:[#allocation24_spill]] }
  0x80   :  { %2194 = vmatprep.subr.msk.mxu0 %vm234_vm0, %v202_v10  ;;  %v193_v12 = vld [vmem:[%s3244_s7] sm:$0xff]  ;;  %v326_v13 = vmul.f32 %v200_v9, %v200_v9  ;;  %v194_v14 = vld [vmem:[%s3244_s7 + $0x8] sm:$0xff]  ;;  %v195_v15 = vld [vmem:[%s3244_s7 + $0x10] sm:$0xff] }
  0x81   :  { %2208 = vmatprep.mubr.msk.f32.mxu1 %vm221_vm1, %v323_v4  ;;  %2195 = vmatpush3.msk.msra.mxu0 %vm234_vm0, %v202_v10  ;;  %v196_v16 = vld [vmem:[%s3244_s7 + $0x18] sm:$0xff]  ;;  %v208_v18 = vld [vmem:[%s3245_s21 + $0x10] sm:$0xff]  ;;  %v207_v19 = vld [vmem:[%s3245_s21 + $0x8] sm:$0xff] }
  0x82   :  { %2209 = vmatmul.mubr.msk.f32.vlgmr.msra.gmra.mxu1 %vm221_vm1, %v324_v7  ;;  %2196 = vmatprep.subr.mxu0 %v201_v11  ;;  %v209_v17 = vld [vmem:[%s3245_s21 + $0x18] sm:$0xff]  ;;  %v206_v20 = vld [vmem:[%s3245_s21] sm:$0xff]  ;;  %v212_v22 = vld [vmem:[%s3246_s17 + $0x10] sm:$0xff] }
  0x83   :  { %2211 = vmatprep.mubr.msk.f32.mxu1 %vm221_vm1, %v325_v8  ;;  %2197 = vmatpush3.msra.mxu0 %v201_v11  ;;  %v213_v21 = vld [vmem:[%s3246_s17 + $0x18] sm:$0xff]  ;;  %v211_v23 = vld [vmem:[%s3246_s17 + $0x8] sm:$0xff]  ;;  %v210_v24 = vld [vmem:[%s3246_s17] sm:$0xff] }
  0x84   :  { %2198 = vmatprep.mubr.msk.f32.mxu0 %vm221_vm1, %v193_v12  ;;  %2214 = vmatprep.subr.mxu0 %v209_v17  ;;  %v2045_v0 = vld [vmem:[%s3247_s8] ss:$0 sm:$0xff] }
  0x85   :  { %2199 = vmatmul.mubr.msk.f32.vlgmr.msra.gmra.mxu0 %vm221_vm1, %v194_v14  ;;  %2228 = vmatprep.subr.mxu1 %v213_v21 }
  0x86   :  { %2212 = vmatmul.mubr.msk.f32.gmra.mxu1 %vm221_vm1, %v326_v13  ;;  %2201 = vmatprep.mubr.msk.f32.mxu0 %vm221_vm1, %v195_v15 }
  0x87   :  { %2215 = vmatpush3.msra.mxu0 %v209_v17  ;;  %2229 = vmatpush3.msra.mxu1 %v213_v21 }
  0x88   :  { %2216 = vmatprep.subr.mxu0 %v208_v18  ;;  %2230 = vmatprep.subr.mxu1 %v212_v22 }
  0x89   :  { %2202 = vmatmul.mubr.msk.f32.gmra.mxu0 %vm221_vm1, %v196_v16  ;;  %2231 = vmatpush3.msra.mxu1 %v212_v22 }
  0x8a   :  { %2217 = vmatpush3.msra.mxu0 %v208_v18  ;;  %2232 = vmatprep.subr.mxu1 %v211_v23 }
  0x8b   :  { %2218 = vmatprep.subr.mxu0 %v207_v19  ;;  %2233 = vmatpush3.msra.mxu1 %v211_v23 }
  0x8c   :  { %2219 = vmatpush3.msra.mxu0 %v207_v19  ;;  %2234 = vmatprep.subr.mxu1 %v210_v24 }
  0x8d   :  { %2220 = vmatprep.subr.mxu0 %v206_v20  ;;  %2235 = vmatpush3.msra.mxu1 %v210_v24 }
  0x8e   :  { %2221 = vmatpush3.msra.mxu0 %v206_v20 }
  0x8f   :  { %2242 = vmatprep.subr.mxu0 %v2945_v25 }
 0x142   :  { %v2210_v26 = vpop.f32.mrf.mxu1 }
 0x143   :  { %v428_v27 = vmax.f32 %v2210_v26, 1e-07 }
 0x144   :  { %v408_v28 = vpop.f32.mrf.mxu1 }
 0x145   :  { %2375 = vrsqrt.f32 %v428_v27  ;;  %v427_v29 = vmax.f32 %v408_v28, 1e-07  ;;  %vm440_vm2 = vcmp.eq.f32.partialorder %v428_v27, inf  ;;  %v443_v36 = vand.u32 2147483648, %v428_v27  ;;  %v2200_v61 = vpop.f32.mrf.mxu0 }
 0x146   :  { %v2213_v30 = vpop.f32.mrf.mxu1  ;;  %vm442_vm3 = vcmp.eq.f32.partialorder %v428_v27, 0.0  ;;  %v310_v1 = vadd.f32 %v2200_v61, %v2045_v0 }
 0x147   :  { %v430_v31 = vmax.f32 %v2213_v30, 1e-07  ;;  %2377 = vrsqrt.f32 %v427_v29  ;;  %vm433_vm4 = vcmp.eq.f32.partialorder %v427_v29, inf  ;;  %v436_v42 = vand.u32 2147483648, %v427_v29  ;;  %v304_v63 = vpop.f32.mrf.mxu0 }
 0x148   :  { %v418_v32 = vpop.f32.mrf.mxu1  ;;  %vm435_vm5 = vcmp.eq.f32.partialorder %v427_v29, 0.0  ;;  %v2963_v5 = vadd.f32 %v2045_v0, %v304_v63 }
 0x149   :  { %2379 = vrsqrt.f32 %v430_v31  ;;  %v429_v33 = vmax.f32 %v418_v32, 1e-07  ;;  %vm454_vm6 = vcmp.eq.f32.partialorder %v430_v31, inf  ;;  %v457_v46 = vand.u32 2147483648, %v430_v31  ;;  %v2203_v2 = vpop.f32.mrf.mxu0 }
 0x14a   :  { %vm456_vm7 = vcmp.eq.f32.partialorder %v430_v31, 0.0  ;;  %v2965_v9 = vadd.f32 %v2203_v2, %v2045_v0 }
 0x14b   :  { %2381 = vrsqrt.f32 %v429_v33  ;;  %vm447_vm8 = vcmp.eq.f32.partialorder %v429_v33, inf  ;;  %v450_v54 = vand.u32 2147483648, %v429_v33  ;;  %vm449_vm9 = vcmp.eq.f32.partialorder %v429_v33, 0.0  ;;  %v314_v10 = vpop.f32.mrf.mxu0 }
 0x14c   :  { %v2969_v17 = vadd.f32 %v2045_v0, %v314_v10 }
 0x152   :  { %v2376_v34 = vpop.eup %2375 }
 0x153   :  { %v439_v35 = vmul.f32 %v2376_v34, %v428_v27  ;;  %v524_v34 = vmul.f32 %v310_v1, %v310_v1 }
 0x154   :  { %v2378_v37 = vpop.eup %2377 }
 0x155   :  { %v441_v38 = vsel %vm440_vm2, %v428_v27, %v439_v35  ;;  %v432_v40 = vmul.f32 %v2378_v37, %v427_v29 }
 0x156   :  { %v2380_v39 = vpop.eup %2379  ;;  %v444_v41 = vsel %vm442_vm3, %v443_v36, %v441_v38  ;;  %v523_v36 = vmul.f32 %v2963_v5, %v2963_v5 }
 0x157   :  { %v453_v43 = vmul.f32 %v2380_v39, %v430_v31  ;;  %v460_v44 = vadd.f32 1e-06, %v444_v41  ;;  %v434_v45 = vsel %vm433_vm4, %v427_v29, %v432_v40  ;;  %v526_v40 = vmul.f32 %v2965_v9, %v2965_v9 }
 0x158   :  { %v2382_v47 = vpop.eup %2381  ;;  %v437_v50 = vsel %vm435_vm5, %v436_v42, %v434_v45 }
 0x159   :  { %v455_v48 = vsel %vm454_vm6, %v430_v31, %v453_v43  ;;  %v2948_v49 = vmax.f32 %v460_v44, 1e-06  ;;  %v446_v51 = vmul.f32 %v2382_v47, %v429_v33  ;;  %v459_v52 = vadd.f32 1e-06, %v437_v50 }
 0x15a   :  { %v458_v53 = vsel %vm456_vm7, %v457_v46, %v455_v48  ;;  %v525_v44 = vmul.f32 %v2969_v17, %v2969_v17 }
 0x15b   :  { %2383 = vrcp.f32 %v2948_v49  ;;  %v462_v55 = vadd.f32 1e-06, %v458_v53  ;;  %v448_v56 = vsel %vm447_vm8, %v429_v33, %v446_v51  ;;  %v2951_v57 = vmax.f32 %v459_v52, 1e-06 }
 0x15c   :  { %v451_v59 = vsel %vm449_vm9, %v450_v54, %v448_v56  ;;  %v528_v35 = vmul.f32 %v2948_v49, %v2948_v49  ;;  %v540_v48 = vmul.f32 %v2948_v49, %v310_v1 }
 0x15d   :  { %v2953_v58 = vmax.f32 %v462_v55, 1e-06  ;;  %2385 = vrcp.f32 %v2951_v57  ;;  %v461_v60 = vadd.f32 1e-06, %v451_v59  ;;  %v527_v37 = vmul.f32 %v2951_v57, %v2951_v57 }
 0x15e   :  { %v532_v47 = vadd.f32 %v528_v35, %v524_v34  ;;  %v539_v50 = vmul.f32 %v2951_v57, %v2963_v5 }
 0x15f   :  { %2387 = vrcp.f32 %v2953_v58  ;;  %v2957_v62 = vmax.f32 %v461_v60, 1e-06  ;;  %v530_v41 = vmul.f32 %v2953_v58, %v2953_v58  ;;  %v531_v52 = vadd.f32 %v527_v37, %v523_v36 }
 0x160   :  { %v542_v54 = vmul.f32 %v2953_v58, %v2965_v9 }
 0x161   :  { %2389 = vrcp.f32 %v2957_v62  ;;  %v534_v61 = vadd.f32 %v530_v41, %v526_v40 }
 0x168   :  { %v2384_v3 = vpop.eup %2383 }
 0x169   :  { %v472_v4 = vmul.f32 %v2384_v3, %v310_v1 }
 0x16a   :  { %v2386_v6 = vpop.eup %2385 }
 0x16b   :  { %v476_v7 = vmul.f32 0.70710677, %v472_v4  ;;  %v492_v8 = vmul.f32 -0.5, %v472_v4  ;;  %v471_v12 = vmul.f32 %v2386_v6, %v2963_v5 }
 0x16c   :  { %v2388_v11 = vpop.eup %2387 }
 0x16d   :  { %2391 = verf.f32 %v476_v7  ;;  %v496_v13 = vmul.f32 %v492_v8, %v472_v4  ;;  %v474_v14 = vmul.f32 %v2388_v11, %v2965_v9  ;;  %v475_v15 = vmul.f32 0.70710677, %v471_v12 }
 0x16e   :  { %v491_v16 = vmul.f32 -0.5, %v471_v12  ;;  %v2390_v18 = vpop.eup %2389  ;;  %v529_v4 = vmul.f32 %v2957_v62, %v2957_v62  ;;  %v541_v11 = vmul.f32 %v2957_v62, %v2969_v17 }
 0x16f   :  { %v501_v19 = vmul.f32 1.442695, %v496_v13  ;;  %v478_v20 = vmul.f32 0.70710677, %v474_v14  ;;  %v494_v21 = vmul.f32 -0.5, %v474_v14  ;;  %2393 = verf.f32 %v475_v15 }
 0x170   :  { %v495_v22 = vmul.f32 %v491_v16, %v471_v12  ;;  %v473_v23 = vmul.f32 %v2390_v18, %v2969_v17 }
 0x171   :  { %2395 = vpow2.f32 %v501_v19  ;;  %v498_v24 = vmul.f32 %v494_v21, %v474_v14 }
 0x172   :  { %v499_v26 = vmul.f32 1.442695, %v495_v22  ;;  %2397 = verf.f32 %v478_v20  ;;  %v477_v27 = vmul.f32 0.70710677, %v473_v23  ;;  %v493_v28 = vmul.f32 -0.5, %v473_v23 }
 0x173   :  { %v505_v29 = vmul.f32 1.442695, %v498_v24 }
 0x174   :  { %2399 = vpow2.f32 %v499_v26  ;;  %v497_v30 = vmul.f32 %v493_v28, %v473_v23 }
 0x175   :  { %2401 = vpow2.f32 %v505_v29 }
 0x176   :  { %2403 = verf.f32 %v477_v27  ;;  %v503_v31 = vmul.f32 1.442695, %v497_v30 }
 0x178   :  { %2405 = vpow2.f32 %v503_v31 }
 0x17a   :  { %v2392_v32 = vpop.eup %2391 }
 0x17b   :  { %v484_v33 = vadd.f32 1.0, %v2392_v32 }
 0x17c   :  { %v2394_v38 = vpop.eup %2393 }
 0x17d   :  { %v488_v39 = vmul.f32 0.5, %v484_v33  ;;  %v483_v43 = vadd.f32 1.0, %v2394_v38 }
 0x17e   :  { %v2396_v42 = vpop.eup %2395 }
 0x17f   :  { %v2398_v45 = vpop.eup %2397  ;;  %v508_v46 = vmul.f32 0.3989423, %v2396_v42  ;;  %v487_v51 = vmul.f32 0.5, %v483_v43  ;;  %v512_v56 = vmul.f32 %v488_v39, %v310_v1  ;;  %v536_v0 = vmul.f32 %v532_v47, %v488_v39 }
 0x180   :  { %v486_v53 = vadd.f32 1.0, %v2398_v45 }
 0x181   :  { %v2400_v55 = vpop.eup %2399  ;;  %v516_v59 = vmul.f32 %v508_v46, %v2948_v49  ;;  %v544_v60 = vmul.f32 %v540_v48, %v508_v46  ;;  %v511_v8 = vmul.f32 %v487_v51, %v2963_v5  ;;  %v535_v20 = vmul.f32 %v531_v52, %v487_v51 }
 0x182   :  { %v2402_v63 = vpop.eup %2401  ;;  %v507_v2 = vmul.f32 0.3989423, %v2400_v55  ;;  %v490_v3 = vmul.f32 0.5, %v486_v53  ;;  %v533_v5 = vadd.f32 %v529_v4, %v525_v44 }
 0x183   :  { %v2404_v6 = vpop.eup %2403  ;;  %v520_v7 = vadd.f32 %v516_v59, %v512_v56  ;;  %v510_v10 = vmul.f32 0.3989423, %v2402_v63  ;;  %v548_v1 = vadd.f32 %v544_v60, %v536_v0 }
 0x184   :  { %v543_v12 = vmul.f32 %v539_v50, %v507_v2  ;;  %v514_v49 = vmul.f32 %v490_v3, %v2965_v9  ;;  %v485_v13 = vadd.f32 1.0, %v2404_v6  ;;  %v515_v18 = vmul.f32 %v507_v2, %v2951_v57 }
 0x185   :  { %v2406_v14 = vpop.eup %2405  ;;  %v552_v15 = vmul.f32 %v520_v7, %v520_v7  ;;  %v546_v16 = vmul.f32 %v542_v54, %v510_v10  ;;  %v518_v19 = vmul.f32 %v510_v10, %v2953_v58  ;;  %v538_v24 = vmul.f32 %v534_v61, %v490_v3 }
 0x186   :  { %v489_v21 = vmul.f32 0.5, %v485_v13  ;;  %v509_v22 = vmul.f32 0.3989423, %v2406_v14  ;;  %v519_v26 = vadd.f32 %v515_v18, %v511_v8  ;;  %v547_v28 = vadd.f32 %v543_v12, %v535_v20  ;;  %v832_v12 = vld [vmem:[%s3211_s9] sm:$0xff]  ;;  %v838_v13 = vld [vmem:[%s3212_s10 + $0x10] sm:$0xff]  ;;  %v837_v14 = vld [vmem:[%s3212_s10 + $0x8] sm:$0xff] }
 0x187   :  { %v556_v23 = vsub.f32 %v548_v1, %v552_v15  ;;  %v522_v27 = vadd.f32 %v518_v19, %v514_v49  ;;  %v550_v32 = vadd.f32 %v546_v16, %v538_v24  ;;  %v833_v1 = vld [vmem:[%s3211_s9 + $0x8] sm:$0xff]  ;;  %v839_v49 = vld [vmem:[%s3212_s10 + $0x18] sm:$0xff]  ;;  %v836_v15 = vld [vmem:[%s3212_s10] sm:$0xff] }
 0x188   :  { %v513_v29 = vmul.f32 %v489_v21, %v2969_v17  ;;  %v545_v9 = vmul.f32 %v541_v11, %v509_v22  ;;  %v517_v30 = vmul.f32 %v509_v22, %v2957_v62  ;;  %v551_v33 = vmul.f32 %v519_v26, %v519_v26  ;;  %2222 = vmatprep.mubr.msk.f32.mxu0 %vm601_vm10, %v519_v26  ;;  %v834_v11 = vld [vmem:[%s3211_s9 + $0x10] sm:$0xff]  ;;  %v2056_v18 = vld [vmem:[%s3248_s0] ss:$0 sm:$0xff] }
 0x189   :  { %v560_v31 = vadd.f32 1e-06, %v556_v23  ;;  %v554_v57 = vmul.f32 %v522_v27, %v522_v27  ;;  %v537_v58 = vmul.f32 %v533_v5, %v489_v21  ;;  %2223 = vmatmul.mubr.msk.f32.vlgmr.msra.gmra.mxu0 %vm601_vm10, %v520_v7  ;;  %2256 = vmatprep.subr.mxu1 %v839_v49 }
 0x18a   :  { %v521_v34 = vadd.f32 %v517_v30, %v513_v29  ;;  %v555_v36 = vsub.f32 %v547_v28, %v551_v33  ;;  %2243 = vmatpush3.msra.mxu0 %v2945_v25 }
 0x18b   :  { %v564_v35 = vmax.f32 %v560_v31, 1e-06  ;;  %v558_v37 = vsub.f32 %v550_v32, %v554_v57  ;;  %v549_v38 = vadd.f32 %v545_v9, %v537_v58  ;;  %2244 = vmatprep.subr.mxu0 %v834_v11 }
 0x18c   :  { %v553_v17 = vmul.f32 %v521_v34, %v521_v34  ;;  %2225 = vmatprep.mubr.msk.f32.mxu0 %vm601_vm10, %v521_v34  ;;  %v559_v62 = vadd.f32 1e-06, %v555_v36  ;;  %2245 = vmatpush3.msra.mxu0 %v834_v11 }
 0x18d   :  { %2407 = vrsqrt.f32 %v564_v35  ;;  %v562_v39 = vadd.f32 1e-06, %v558_v37  ;;  %2226 = vmatmul.mubr.msk.f32.gmra.mxu0 %vm601_vm10, %v522_v27  ;;  %vm576_vm11 = vcmp.eq.f32.partialorder %v564_v35, inf  ;;  %v579_v51 = vand.u32 2147483648, %v564_v35  ;;  %2246 = vmatprep.subr.mxu0 %v833_v1 }
 0x18e   :  { %v557_v40 = vsub.f32 %v549_v38, %v553_v17  ;;  %v563_v41 = vmax.f32 %v559_v62, 1e-06  ;;  %vm578_vm13 = vcmp.eq.f32.partialorder %v564_v35, 0.0  ;;  %2247 = vmatpush3.msra.mxu0 %v833_v1 }
 0x18f   :  { %v566_v42 = vmax.f32 %v562_v39, 1e-06  ;;  %2248 = vmatprep.subr.mxu0 %v832_v12 }
 0x190   :  { %v561_v43 = vadd.f32 1e-06, %v557_v40  ;;  %2409 = vrsqrt.f32 %v563_v41  ;;  %vm569_vm12 = vcmp.eq.f32.partialorder %v563_v41, inf  ;;  %v572_v52 = vand.u32 2147483648, %v563_v41  ;;  %2249 = vmatpush3.msra.mxu0 %v832_v12 }
 0x191   :  { %2411 = vrsqrt.f32 %v566_v42  ;;  %vm571_vm14 = vcmp.eq.f32.partialorder %v563_v41, 0.0  ;;  %vm590_vm15 = vcmp.eq.f32.partialorder %v566_v42, inf  ;;  %v593_v2 = vand.u32 2147483648, %v566_v42 }
 0x192   :  { %v565_v44 = vmax.f32 %v561_v43, 1e-06  ;;  %vm592_vm2 = vcmp.eq.f32.partialorder %v566_v42, 0.0 }
 0x194   :  { %2413 = vrsqrt.f32 %v565_v44  ;;  %vm583_vm0 = vcmp.eq.f32.partialorder %v565_v44, inf  ;;  %v586_v0 = vand.u32 2147483648, %v565_v44  ;;  %vm585_vm1 = vcmp.eq.f32.partialorder %v565_v44, 0.0 }
 0x19a   :  { %v2408_v45 = vpop.eup %2407 }
 0x19b   :  { %v575_v46 = vmul.f32 %v2408_v45, %v564_v35 }
 0x19d   :  { %v2410_v25 = vpop.eup %2409  ;;  %v577_v47 = vsel %vm576_vm11, %v564_v35, %v575_v46 }
 0x19e   :  { %v2412_v48 = vpop.eup %2411  ;;  %v568_v50 = vmul.f32 %v2410_v25, %v563_v41  ;;  %v580_v56 = vsel %vm578_vm13, %v579_v51, %v577_v47 }
 0x19f   :  { %v589_v53 = vmul.f32 %v2412_v48, %v566_v42  ;;  %v700_v3 = vmul.f32 %v580_v56, %v580_v56  ;;  %v841_v56 = vld [vmem:[%s3214_s12] sm:$0xff] }
 0x1a0   :  { %v570_v55 = vsel %vm569_vm12, %v563_v41, %v568_v50 }
 0x1a1   :  { %v2414_v54 = vpop.eup %2413  ;;  %v573_v59 = vsel %vm571_vm14, %v572_v52, %v570_v55  ;;  %v591_v61 = vsel %vm590_vm15, %v566_v42, %v589_v53  ;;  %v844_v53 = vld [vmem:[%s3214_s12 + $0x18] sm:$0xff]  ;;  %v842_v55 = vld [vmem:[%s3214_s12 + $0x8] sm:$0xff] }
 0x1a2   :  { %v582_v60 = vmul.f32 %v2414_v54, %v565_v44  ;;  %v699_v63 = vmul.f32 %v573_v59, %v573_v59  ;;  %v594_v7 = vsel %vm592_vm2, %v593_v2, %v591_v61  ;;  %v843_v54 = vld [vmem:[%s3214_s12 + $0x10] sm:$0xff]  ;;  %2270 = vmatprep.subr.mxu0 %v844_v53  ;;  %v848_v59 = vld [vmem:[%s3215_s13 + $0x18] sm:$0xff]  ;;  %v846_v61 = vld [vmem:[%s3215_s13 + $0x8] sm:$0xff] }
 0x1a3   :  { %v702_v10 = vmul.f32 %v594_v7, %v594_v7 }
 0x1a4   :  { %v584_v4 = vsel %vm583_vm0, %v565_v44, %v582_v60  ;;  %2236 = vmatprep.mubr.msk.f32.mxu1 %vm601_vm10, %v699_v63  ;;  %v847_v60 = vld [vmem:[%s3215_s13 + $0x10] sm:$0xff]  ;;  %v845_v63 = vld [vmem:[%s3215_s13] sm:$0xff] }
 0x1a5   :  { %v587_v6 = vsel %vm585_vm1, %v586_v0, %v584_v4  ;;  %2237 = vmatmul.mubr.msk.f32.vlgmr.msra.gmra.mxu1 %vm601_vm10, %v700_v3  ;;  %v3068_v0 = vld [vmem:[%s3217_s15 + $0x18] sm:$0xff] }
 0x1a6   :  { %v701_v8 = vmul.f32 %v587_v6, %v587_v6  ;;  %2257 = vmatpush3.msra.mxu1 %v839_v49 }
 0x1a7   :  { %2258 = vmatprep.subr.mxu1 %v838_v13 }
 0x1a8   :  { %2239 = vmatprep.mubr.msk.f32.mxu1 %vm601_vm10, %v701_v8  ;;  %2259 = vmatpush3.msra.mxu1 %v838_v13 }
 0x1a9   :  { %2240 = vmatmul.mubr.msk.f32.gmra.mxu1 %vm601_vm10, %v702_v10  ;;  %2260 = vmatprep.subr.mxu1 %v837_v14 }
 0x1aa   :  { %2261 = vmatpush3.msra.mxu1 %v837_v14 }
 0x1ab   :  { %2262 = vmatprep.subr.mxu1 %v836_v15 }
 0x1ac   :  { %2263 = vmatpush3.msra.mxu1 %v836_v15 }
 0x1ad   :  { %2284 = vmatprep.subr.mxu1 %v848_v59 }
 0x249   :  { %v2224_v16 = vpop.f32.mrf.mxu0 }
 0x24a   :  { %v686_v21 = vadd.f32 %v2224_v16, %v2056_v18 }
 0x24b   :  { %v680_v19 = vpop.f32.mrf.mxu0 }
 0x24c   :  { %v681_v20 = vadd.f32 %v2056_v18, %v680_v19 }
 0x24d   :  { %v2227_v22 = vpop.f32.mrf.mxu0 }
 0x24e   :  { %2250 = vmatprep.mubr.msk.f32.mxu0 %vm601_vm10, %v681_v20  ;;  %v696_v24 = vadd.f32 %v2227_v22, %v2056_v18 }
 0x24f   :  { %v690_v5 = vpop.f32.mrf.mxu0  ;;  %2251 = vmatmul.mubr.msk.f32.vlgmr.msra.gmra.mxu0 %vm601_vm10, %v686_v21 }
 0x250   :  { %v691_v23 = vadd.f32 %v2056_v18, %v690_v5  ;;  %2271 = vmatpush3.msra.mxu0 %v844_v53 }
 0x251   :  { %2272 = vmatprep.subr.mxu0 %v843_v54 }
 0x252   :  { %2253 = vmatprep.mubr.msk.f32.mxu0 %vm601_vm10, %v691_v23  ;;  %2273 = vmatpush3.msra.mxu0 %v843_v54 }
 0x253   :  { %2254 = vmatmul.mubr.msk.f32.gmra.mxu0 %vm601_vm10, %v696_v24  ;;  %2274 = vmatprep.subr.mxu0 %v842_v55 }
 0x254   :  { %2275 = vmatpush3.msra.mxu0 %v842_v55 }
 0x255   :  { %2276 = vmatprep.subr.mxu0 %v841_v56 }
 0x256   :  { %2277 = vmatpush3.msra.mxu0 %v841_v56 }
 0x257   :  { %2298 = vmatprep.subr.mxu0 %v3068_v0 }
 0x265   :  { %v2238_v26 = vpop.f32.mrf.mxu1 }
 0x266   :  { %v801_v27 = vmax.f32 %v2238_v26, 1e-07 }
 0x267   :  { %v781_v28 = vpop.f32.mrf.mxu1 }
 0x268   :  { %2415 = vrsqrt.f32 %v801_v27  ;;  %v800_v29 = vmax.f32 %v781_v28, 1e-07  ;;  %vm813_vm3 = vcmp.eq.f32.partialorder %v801_v27, inf  ;;  %v816_v36 = vand.u32 2147483648, %v801_v27 }
 0x269   :  { %v2241_v9 = vpop.f32.mrf.mxu1  ;;  %vm815_vm4 = vcmp.eq.f32.partialorder %v801_v27, 0.0 }
 0x26a   :  { %v803_v30 = vmax.f32 %v2241_v9, 1e-07  ;;  %2417 = vrsqrt.f32 %v800_v29  ;;  %vm806_vm5 = vcmp.eq.f32.partialorder %v800_v29, inf  ;;  %v809_v38 = vand.u32 2147483648, %v800_v29 }
 0x26b   :  { %v791_v31 = vpop.f32.mrf.mxu1  ;;  %vm808_vm6 = vcmp.eq.f32.partialorder %v800_v29, 0.0 }
 0x26c   :  { %2419 = vrsqrt.f32 %v803_v30  ;;  %v802_v32 = vmax.f32 %v791_v31, 1e-07  ;;  %vm827_vm7 = vcmp.eq.f32.partialorder %v803_v30, inf  ;;  %v830_v46 = vand.u32 2147483648, %v803_v30 }
 0x26d   :  { %vm829_vm11 = vcmp.eq.f32.partialorder %v803_v30, 0.0 }
 0x26e   :  { %2421 = vrsqrt.f32 %v802_v32  ;;  %vm820_vm8 = vcmp.eq.f32.partialorder %v802_v32, inf  ;;  %v823_v45 = vand.u32 2147483648, %v802_v32  ;;  %vm822_vm9 = vcmp.eq.f32.partialorder %v802_v32, 0.0 }
 0x275   :  { %v2416_v33 = vpop.eup %2415 }
 0x276   :  { %v812_v57 = vmul.f32 %v2416_v33, %v801_v27 }
 0x277   :  { %v2418_v58 = vpop.eup %2417 }
 0x278   :  { %v814_v34 = vsel %vm813_vm3, %v801_v27, %v812_v57  ;;  %v805_v37 = vmul.f32 %v2418_v58, %v800_v29 }
 0x279   :  { %v2420_v35 = vpop.eup %2419  ;;  %v817_v40 = vsel %vm815_vm4, %v816_v36, %v814_v34 }
 0x27a   :  { %v826_v17 = vmul.f32 %v2420_v35, %v803_v30  ;;  %v807_v39 = vsel %vm806_vm5, %v800_v29, %v805_v37  ;;  %v954_v25 = vmul.f32 %v817_v40, %v817_v40 }
 0x27b   :  { %v2422_v62 = vpop.eup %2421  ;;  %v810_v41 = vsel %vm808_vm6, %v809_v38, %v807_v39  ;;  %v2065_v38 = vld [vmem:[#allocation5] ss:$0 sm:$0xff] }
 0x27c   :  { %v819_v42 = vmul.f32 %v2422_v62, %v802_v32  ;;  %v828_v43 = vsel %vm827_vm7, %v803_v30, %v826_v17  ;;  %v953_v44 = vmul.f32 %v810_v41, %v810_v41 }
 0x27d   :  { %v831_v50 = vsel %vm829_vm11, %v830_v46, %v828_v43 }
 0x27e   :  { %v821_v47 = vsel %vm820_vm8, %v802_v32, %v819_v42  ;;  %2264 = vmatprep.mubr.msk.f32.mxu1 %vm601_vm10, %v953_v44  ;;  %v956_v52 = vmul.f32 %v831_v50, %v831_v50 }
 0x27f   :  { %v824_v48 = vsel %vm822_vm9, %v823_v45, %v821_v47  ;;  %2265 = vmatmul.mubr.msk.f32.vlgmr.msra.gmra.mxu1 %vm601_vm10, %v954_v25 }
 0x280   :  { %v955_v51 = vmul.f32 %v824_v48, %v824_v48  ;;  %2285 = vmatpush3.msra.mxu1 %v848_v59 }
 0x281   :  { %2286 = vmatprep.subr.mxu1 %v847_v60 }
 0x282   :  { %2267 = vmatprep.mubr.msk.f32.mxu1 %vm601_vm10, %v955_v51  ;;  %2287 = vmatpush3.msra.mxu1 %v847_v60 }
 0x283   :  { %2268 = vmatmul.mubr.msk.f32.gmra.mxu1 %vm601_vm10, %v956_v52  ;;  %2288 = vmatprep.subr.mxu1 %v846_v61 }
 0x284   :  { %2289 = vmatpush3.msra.mxu1 %v846_v61 }
 0x285   :  { %2290 = vmatprep.subr.mxu1 %v845_v63 }
 0x286   :  { %2291 = vmatpush3.msra.mxu1 %v845_v63 }
 0x30f   :  { %v2252_v35 = vpop.f32.mrf.mxu0 }
 0x310   :  { %v940_v17 = vadd.f32 %v2252_v35, %v2065_v38 }
 0x311   :  { %v934_v37 = vpop.f32.mrf.mxu0 }
 0x312   :  { %v3083_v41 = vadd.f32 %v2065_v38, %v934_v37 }
 0x313   :  { %v2255_v62 = vpop.f32.mrf.mxu0 }
 0x314   :  { %v3085_v43 = vadd.f32 %v2255_v62, %v2065_v38 }
 0x315   :  { %v944_v44 = vpop.f32.mrf.mxu0 }
 0x316   :  { %v3089_v51 = vadd.f32 %v2065_v38, %v944_v44 }
 0x33f   :  { %v2266_v2 = vpop.f32.mrf.mxu1 }
 0x340   :  { %v1055_v3 = vmax.f32 %v2266_v2, 1e-07 }
 0x341   :  { %v1035_v4 = vpop.f32.mrf.mxu1 }
 0x342   :  { %2423 = vrsqrt.f32 %v1055_v3  ;;  %v1054_v6 = vmax.f32 %v1035_v4, 1e-07  ;;  %vm1067_vm12 = vcmp.eq.f32.partialorder %v1055_v3, inf  ;;  %v1070_v49 = vand.u32 2147483648, %v1055_v3 }
 0x343   :  { %v2269_v7 = vpop.f32.mrf.mxu1  ;;  %vm1069_vm13 = vcmp.eq.f32.partialorder %v1055_v3, 0.0 }
 0x344   :  { %v1057_v8 = vmax.f32 %v2269_v7, 1e-07  ;;  %2425 = vrsqrt.f32 %v1054_v6  ;;  %vm1060_vm14 = vcmp.eq.f32.partialorder %v1054_v6, inf  ;;  %v1063_v20 = vand.u32 2147483648, %v1054_v6 }
 0x345   :  { %v1045_v10 = vpop.f32.mrf.mxu1  ;;  %vm1062_vm15 = vcmp.eq.f32.partialorder %v1054_v6, 0.0 }
 0x346   :  { %2427 = vrsqrt.f32 %v1057_v8  ;;  %v1056_v11 = vmax.f32 %v1045_v10, 1e-07  ;;  %vm1081_vm0 = vcmp.eq.f32.partialorder %v1057_v8, inf  ;;  %v1084_v5 = vand.u32 2147483648, %v1057_v8 }
 0x347   :  { %vm1083_vm1 = vcmp.eq.f32.partialorder %v1057_v8, 0.0 }
 0x348   :  { %2429 = vrsqrt.f32 %v1056_v11  ;;  %vm1074_vm2 = vcmp.eq.f32.partialorder %v1056_v11, inf  ;;  %v1077_v30 = vand.u32 2147483648, %v1056_v11  ;;  %vm1076_vm3 = vcmp.eq.f32.partialorder %v1056_v11, 0.0 }
 0x34f   :  { %v2424_v1 = vpop.eup %2423 }
 0x350   :  { %v1066_v12 = vmul.f32 %v2424_v1, %v1055_v3 }
 0x351   :  { %v2426_v13 = vpop.eup %2425 }
 0x352   :  { %v1068_v14 = vsel %vm1067_vm12, %v1055_v3, %v1066_v12  ;;  %v1059_v18 = vmul.f32 %v2426_v13, %v1054_v6  ;;  %v1151_v13 = vmul.f32 %v940_v17, %v940_v17 }
 0x353   :  { %v2428_v15 = vpop.eup %2427  ;;  %v1071_v16 = vsel %vm1069_vm13, %v1070_v49, %v1068_v14  ;;  %v1150_v14 = vmul.f32 %v3083_v41, %v3083_v41 }
 0x354   :  { %v1087_v19 = vadd.f32 1e-06, %v1071_v16  ;;  %v1080_v21 = vmul.f32 %v2428_v15, %v1057_v8  ;;  %v1061_v22 = vsel %vm1060_vm14, %v1054_v6, %v1059_v18 }
 0x355   :  { %v2430_v23 = vpop.eup %2429  ;;  %v1064_v27 = vsel %vm1062_vm15, %v1063_v20, %v1061_v22  ;;  %v1152_v20 = vmul.f32 %v3089_v51, %v3089_v51 }
 0x356   :  { %v3071_v24 = vmax.f32 %v1087_v19, 1e-06  ;;  %v1082_v26 = vsel %vm1081_vm0, %v1057_v8, %v1080_v21  ;;  %v1073_v28 = vmul.f32 %v2430_v23, %v1056_v11  ;;  %v1086_v29 = vadd.f32 1e-06, %v1064_v27 }
 0x357   :  { %v1085_v9 = vsel %vm1083_vm1, %v1084_v5, %v1082_v26  ;;  %v1153_v19 = vmul.f32 %v3085_v43, %v3085_v43 }
 0x358   :  { %2431 = vrcp.f32 %v3071_v24  ;;  %v1089_v31 = vadd.f32 1e-06, %v1085_v9  ;;  %v1075_v32 = vsel %vm1074_vm2, %v1056_v11, %v1073_v28  ;;  %v3074_v33 = vmax.f32 %v1086_v29, 1e-06 }
 0x359   :  { %v1078_v57 = vsel %vm1076_vm3, %v1077_v30, %v1075_v32  ;;  %v1155_v1 = vmul.f32 %v3071_v24, %v3071_v24  ;;  %v1167_v28 = vmul.f32 %v3071_v24, %v940_v17 }
 0x35a   :  { %v3076_v58 = vmax.f32 %v1089_v31, 1e-06  ;;  %2433 = vrcp.f32 %v3074_v33  ;;  %v1088_v34 = vadd.f32 1e-06, %v1078_v57  ;;  %v1154_v12 = vmul.f32 %v3074_v33, %v3074_v33 }
 0x35b   :  { %v1166_v23 = vmul.f32 %v3074_v33, %v3083_v41  ;;  %v1159_v27 = vadd.f32 %v1155_v1, %v1151_v13 }
 0x35c   :  { %2435 = vrcp.f32 %v3076_v58  ;;  %v3080_v36 = vmax.f32 %v1088_v34, 1e-06  ;;  %v1157_v16 = vmul.f32 %v3076_v58, %v3076_v58  ;;  %v1158_v9 = vadd.f32 %v1154_v12, %v1150_v14 }
 0x35d   :  { %v1169_v31 = vmul.f32 %v3076_v58, %v3085_v43 }
 0x35e   :  { %2437 = vrcp.f32 %v3080_v36  ;;  %v1156_v22 = vmul.f32 %v3080_v36, %v3080_v36  ;;  %v1161_v37 = vadd.f32 %v1157_v16, %v1153_v19 }
 0x365   :  { %v2432_v39 = vpop.eup %2431 }
 0x366   :  { %v1099_v40 = vmul.f32 %v2432_v39, %v940_v17  ;;  %v1160_v39 = vadd.f32 %v1156_v22, %v1152_v20 }
 0x367   :  { %v2434_v42 = vpop.eup %2433 }
 0x368   :  { %v1103_v45 = vmul.f32 0.70710677, %v1099_v40  ;;  %v1119_v46 = vmul.f32 -0.5, %v1099_v40  ;;  %v1098_v47 = vmul.f32 %v2434_v42, %v3083_v41 }
 0x369   :  { %v2436_v25 = vpop.eup %2435 }
 0x36a   :  { %2439 = verf.f32 %v1103_v45  ;;  %v1123_v48 = vmul.f32 %v1119_v46, %v1099_v40  ;;  %v1101_v50 = vmul.f32 %v2436_v25, %v3085_v43  ;;  %v1102_v52 = vmul.f32 0.70710677, %v1098_v47 }
 0x36b   :  { %v1118_v53 = vmul.f32 -0.5, %v1098_v47  ;;  %v2438_v54 = vpop.eup %2437  ;;  %v1168_v40 = vmul.f32 %v3080_v36, %v3089_v51 }
 0x36c   :  { %v1128_v55 = vmul.f32 1.442695, %v1123_v48  ;;  %v1105_v56 = vmul.f32 0.70710677, %v1101_v50  ;;  %v1121_v59 = vmul.f32 -0.5, %v1101_v50  ;;  %2441 = verf.f32 %v1102_v52 }
 0x36d   :  { %v1122_v60 = vmul.f32 %v1118_v53, %v1098_v47  ;;  %v1100_v61 = vmul.f32 %v2438_v54, %v3089_v51 }
 0x36e   :  { %2443 = vpow2.f32 %v1128_v55  ;;  %v1125_v63 = vmul.f32 %v1121_v59, %v1101_v50 }
 0x36f   :  { %v1126_v2 = vmul.f32 1.442695, %v1122_v60  ;;  %v1104_v3 = vmul.f32 0.70710677, %v1100_v61  ;;  %v1120_v4 = vmul.f32 -0.5, %v1100_v61  ;;  %2445 = verf.f32 %v1105_v56 }
 0x370   :  { %v1132_v6 = vmul.f32 1.442695, %v1125_v63 }
 0x371   :  { %2447 = vpow2.f32 %v1126_v2  ;;  %v1124_v7 = vmul.f32 %v1120_v4, %v1100_v61 }
 0x372   :  { %2449 = verf.f32 %v1104_v3 }
 0x373   :  { %v1130_v8 = vmul.f32 1.442695, %v1124_v7  ;;  %2451 = vpow2.f32 %v1132_v6 }
 0x375   :  { %2453 = vpow2.f32 %v1130_v8 }
 0x377   :  { %v2440_v10 = vpop.eup %2439 }
 0x378   :  { %v1111_v11 = vadd.f32 1.0, %v2440_v10 }
 0x379   :  { %v2442_v49 = vpop.eup %2441 }
 0x37a   :  { %v1115_v15 = vmul.f32 0.5, %v1111_v11  ;;  %v1110_v21 = vadd.f32 1.0, %v2442_v49 }
 0x37b   :  { %v2444_v18 = vpop.eup %2443 }
 0x37c   :  { %v2446_v5 = vpop.eup %2445  ;;  %v1135_v26 = vmul.f32 0.3989423, %v2444_v18  ;;  %v1114_v29 = vmul.f32 0.5, %v1110_v21  ;;  %v1139_v57 = vmul.f32 %v1115_v15, %v940_v17  ;;  %v1163_v25 = vmul.f32 %v1159_v27, %v1115_v15 }
 0x37d   :  { %v1113_v30 = vadd.f32 1.0, %v2446_v5 }
 0x37e   :  { %v2448_v32 = vpop.eup %2447  ;;  %v1143_v34 = vmul.f32 %v1135_v26, %v3071_v24  ;;  %v1171_v35 = vmul.f32 %v1167_v28, %v1135_v26  ;;  %v1138_v45 = vmul.f32 %v1114_v29, %v3083_v41  ;;  %v1162_v17 = vmul.f32 %v1158_v9, %v1114_v29 }
 0x37f   :  { %v2450_v38 = vpop.eup %2449  ;;  %v1134_v62 = vmul.f32 0.3989423, %v2448_v32  ;;  %v1117_v42 = vmul.f32 0.5, %v1113_v30 }
 0x380   :  { %v2452_v44 = vpop.eup %2451  ;;  %v1147_v46 = vadd.f32 %v1143_v34, %v1139_v57  ;;  %v1112_v47 = vadd.f32 1.0, %v2450_v38  ;;  %v1175_v53 = vadd.f32 %v1171_v35, %v1163_v25  ;;  %v1460_v25 = vld [vmem:[%s3217_s15 + $0x10] sm:$0xff] }
 0x381   :  { %v1142_v48 = vmul.f32 %v1134_v62, %v3074_v33  ;;  %v1170_v50 = vmul.f32 %v1166_v23, %v1134_v62  ;;  %v1137_v24 = vmul.f32 0.3989423, %v2452_v44  ;;  %v1141_v56 = vmul.f32 %v1117_v42, %v3085_v43 }
 0x382   :  { %v2454_v52 = vpop.eup %2453  ;;  %v1179_v54 = vmul.f32 %v1147_v46, %v1147_v46  ;;  %v1116_v55 = vmul.f32 0.5, %v1112_v47  ;;  %v1165_v63 = vmul.f32 %v1161_v37, %v1117_v42  ;;  %v1459_v47 = vld [vmem:[%s3217_s15 + $0x8] sm:$0xff] }
 0x383   :  { %v1146_v59 = vadd.f32 %v1142_v48, %v1138_v45  ;;  %v1136_v60 = vmul.f32 0.3989423, %v2454_v52  ;;  %v1145_v61 = vmul.f32 %v1137_v24, %v3076_v58  ;;  %v1174_v41 = vadd.f32 %v1170_v50, %v1162_v17  ;;  %v1458_v48 = vld [vmem:[%s3217_s15] sm:$0xff]  ;;  %v1465_v17 = vld [vmem:[%s3218_s16 + $0x18] sm:$0xff]  ;;  %v1464_v50 = vld [vmem:[%s3218_s16 + $0x10] sm:$0xff] }
 0x384   :  { %v1183_v2 = vsub.f32 %v1175_v53, %v1179_v54  ;;  %v1140_v3 = vmul.f32 %v1116_v55, %v3089_v51  ;;  %v1173_v4 = vmul.f32 %v1169_v31, %v1137_v24  ;;  %v1164_v43 = vmul.f32 %v1160_v39, %v1116_v55  ;;  %2312 = vmatprep.subr.mxu1 %v1465_v17  ;;  %v1463_v24 = vld [vmem:[%s3218_s16 + $0x8] sm:$0xff]  ;;  %v1462_v52 = vld [vmem:[%s3218_s16] sm:$0xff]  ;;  %v2074_v54 = vld [vmem:[#allocation7] ss:$0 sm:$0xff] }
 0x385   :  { %v1178_v33 = vmul.f32 %v1146_v59, %v1146_v59  ;;  %2278 = vmatprep.mubr.msk.f32.mxu0 %vm601_vm10, %v1146_v59  ;;  %v1144_v6 = vmul.f32 %v1136_v60, %v3080_v36  ;;  %v1172_v7 = vmul.f32 %v1168_v40, %v1136_v60  ;;  %v1149_v8 = vadd.f32 %v1145_v61, %v1141_v56 }
 0x386   :  { %v1187_v10 = vadd.f32 1e-06, %v1183_v2  ;;  %2279 = vmatmul.mubr.msk.f32.vlgmr.msra.gmra.mxu0 %vm601_vm10, %v1147_v46  ;;  %v1177_v58 = vadd.f32 %v1173_v4, %v1165_v63 }
 0x387   :  { %v1182_v11 = vsub.f32 %v1174_v41, %v1178_v33  ;;  %v1148_v1 = vadd.f32 %v1144_v6, %v1140_v3  ;;  %v1181_v12 = vmul.f32 %v1149_v8, %v1149_v8  ;;  %2299 = vmatpush3.msra.mxu0 %v3068_v0  ;;  %v1176_v13 = vadd.f32 %v1172_v7, %v1164_v43 }
 0x388   :  { %v1191_v49 = vmax.f32 %v1187_v10, 1e-06  ;;  %2300 = vmatprep.subr.mxu0 %v1460_v25 }
 0x389   :  { %v1186_v51 = vadd.f32 1e-06, %v1182_v11  ;;  %v1180_v14 = vmul.f32 %v1148_v1, %v1148_v1  ;;  %2281 = vmatprep.mubr.msk.f32.mxu0 %vm601_vm10, %v1148_v1  ;;  %v1185_v15 = vsub.f32 %v1177_v58, %v1181_v12  ;;  %2301 = vmatpush3.msra.mxu0 %v1460_v25 }
 0x38a   :  { %2282 = vmatmul.mubr.msk.f32.gmra.mxu0 %vm601_vm10, %v1149_v8  ;;  %2455 = vrsqrt.f32 %v1191_v49  ;;  %vm1203_vm4 = vcmp.eq.f32.partialorder %v1191_v49, inf  ;;  %v1206_v27 = vand.u32 2147483648, %v1191_v49  ;;  %vm1205_vm6 = vcmp.eq.f32.partialorder %v1191_v49, 0.0  ;;  %2302 = vmatprep.subr.mxu0 %v1459_v47 }
 0x38b   :  { %v1190_v36 = vmax.f32 %v1186_v51, 1e-06  ;;  %v1184_v16 = vsub.f32 %v1176_v13, %v1180_v14  ;;  %v1189_v18 = vadd.f32 1e-06, %v1185_v15  ;;  %2303 = vmatpush3.msra.mxu0 %v1459_v47 }
 0x38c   :  { %2304 = vmatprep.subr.mxu0 %v1458_v48 }
 0x38d   :  { %v1188_v19 = vadd.f32 1e-06, %v1184_v16  ;;  %v1193_v20 = vmax.f32 %v1189_v18, 1e-06  ;;  %2457 = vrsqrt.f32 %v1190_v36  ;;  %vm1196_vm5 = vcmp.eq.f32.partialorder %v1190_v36, inf  ;;  %2305 = vmatpush3.msra.mxu0 %v1458_v48 }
 0x38e   :  { %v1199_v29 = vand.u32 2147483648, %v1190_v36  ;;  %vm1198_vm7 = vcmp.eq.f32.partialorder %v1190_v36, 0.0 }
 0x38f   :  { %v1192_v21 = vmax.f32 %v1188_v19, 1e-06  ;;  %2459 = vrsqrt.f32 %v1193_v20  ;;  %vm1217_vm8 = vcmp.eq.f32.partialorder %v1193_v20, inf  ;;  %v1220_v38 = vand.u32 2147483648, %v1193_v20 }
 0x390   :  { %vm1219_vm11 = vcmp.eq.f32.partialorder %v1193_v20, 0.0 }
 0x391   :  { %2461 = vrsqrt.f32 %v1192_v21  ;;  %vm1210_vm9 = vcmp.eq.f32.partialorder %v1192_v21, inf  ;;  %v1213_v39 = vand.u32 2147483648, %v1192_v21  ;;  %vm1212_vm12 = vcmp.eq.f32.partialorder %v1192_v21, 0.0 }
 0x397   :  { %v2456_v0 = vpop.eup %2455 }
 0x398   :  { %v1202_v22 = vmul.f32 %v2456_v0, %v1191_v49 }
 0x39a   :  { %v2458_v5 = vpop.eup %2457  ;;  %v1204_v23 = vsel %vm1203_vm4, %v1191_v49, %v1202_v22 }
 0x39b   :  { %v1195_v26 = vmul.f32 %v2458_v5, %v1190_v36  ;;  %v1207_v30 = vsel %vm1205_vm6, %v1206_v27, %v1204_v23 }
 0x39c   :  { %v2460_v28 = vpop.eup %2459  ;;  %v1326_v62 = vmul.f32 %v1207_v30, %v1207_v30  ;;  %v1469_v30 = vld [vmem:[#allocation10 + $0x10] sm:$0xff] }
 0x39d   :  { %v1197_v9 = vsel %vm1196_vm5, %v1190_v36, %v1195_v26  ;;  %v1216_v31 = vmul.f32 %v2460_v28, %v1193_v20 }
 0x39e   :  { %v2462_v32 = vpop.eup %2461  ;;  %v1200_v57 = vsel %vm1198_vm7, %v1199_v29, %v1197_v9  ;;  %v1470_v9 = vld [vmem:[#allocation10 + $0x18] sm:$0xff] }
 0x39f   :  { %v1325_v34 = vmul.f32 %v1200_v57, %v1200_v57  ;;  %v1209_v35 = vmul.f32 %v2462_v32, %v1192_v21  ;;  %v1218_v37 = vsel %vm1217_vm8, %v1193_v20, %v1216_v31  ;;  %2326 = vmatprep.subr.mxu0 %v1470_v9  ;;  %v1468_v31 = vld [vmem:[#allocation10 + $0x8] sm:$0xff]  ;;  %v1467_v32 = vld [vmem:[#allocation10] sm:$0xff] }
 0x3a0   :  { %v1221_v42 = vsel %vm1219_vm11, %v1220_v38, %v1218_v37 }
 0x3a1   :  { %2292 = vmatprep.mubr.msk.f32.mxu1 %vm601_vm10, %v1325_v34  ;;  %v1211_v40 = vsel %vm1210_vm9, %v1192_v21, %v1209_v35  ;;  %v1328_v46 = vmul.f32 %v1221_v42, %v1221_v42 }
 0x3a2   :  { %2293 = vmatmul.mubr.msk.f32.vlgmr.msra.gmra.mxu1 %vm601_vm10, %v1326_v62  ;;  %v1214_v44 = vsel %vm1212_vm12, %v1213_v39, %v1211_v40 }
 0x3a3   :  { %v1327_v45 = vmul.f32 %v1214_v44, %v1214_v44  ;;  %2313 = vmatpush3.msra.mxu1 %v1465_v17 }
 0x3a4   :  { %2314 = vmatprep.subr.mxu1 %v1464_v50 }
 0x3a5   :  { %2295 = vmatprep.mubr.msk.f32.mxu1 %vm601_vm10, %v1327_v45  ;;  %2315 = vmatpush3.msra.mxu1 %v1464_v50 }
 0x3a6   :  { %2296 = vmatmul.mubr.msk.f32.gmra.mxu1 %vm601_vm10, %v1328_v46  ;;  %2316 = vmatprep.subr.mxu1 %v1463_v24 }
 0x3a7   :  { %2317 = vmatpush3.msra.mxu1 %v1463_v24 }
 0x3a8   :  { %2318 = vmatprep.subr.mxu1 %v1462_v52 }
 0x3a9   :  { %2319 = vmatpush3.msra.mxu1 %v1462_v52 }
 0x446   :  { %v2280_v53 = vpop.f32.mrf.mxu0 }
 0x447   :  { %v1312_v59 = vadd.f32 %v2280_v53, %v2074_v54 }
 0x448   :  { %v1306_v55 = vpop.f32.mrf.mxu0 }
 0x449   :  { %v1307_v56 = vadd.f32 %v2074_v54, %v1306_v55 }
 0x44a   :  { %v2283_v60 = vpop.f32.mrf.mxu0 }
 0x44b   :  { %2306 = vmatprep.mubr.msk.f32.mxu0 %vm601_vm10, %v1307_v56  ;;  %v1322_v41 = vadd.f32 %v2283_v60, %v2074_v54 }
 0x44c   :  { %v1316_v61 = vpop.f32.mrf.mxu0  ;;  %2307 = vmatmul.mubr.msk.f32.vlgmr.msra.gmra.mxu0 %vm601_vm10, %v1312_v59 }
 0x44d   :  { %v1317_v63 = vadd.f32 %v2074_v54, %v1316_v61  ;;  %2327 = vmatpush3.msra.mxu0 %v1470_v9 }
 0x44e   :  { %2328 = vmatprep.subr.mxu0 %v1469_v30 }
 0x44f   :  { %2309 = vmatprep.mubr.msk.f32.mxu0 %vm601_vm10, %v1317_v63  ;;  %2329 = vmatpush3.msra.mxu0 %v1469_v30 }
 0x450   :  { %2310 = vmatmul.mubr.msk.f32.gmra.mxu0 %vm601_vm10, %v1322_v41  ;;  %2330 = vmatprep.subr.mxu0 %v1468_v31 }
 0x451   :  { %2331 = vmatpush3.msra.mxu0 %v1468_v31 }
 0x452   :  { %2332 = vmatprep.subr.mxu0 %v1467_v32 }
 0x453   :  { %2333 = vmatpush3.msra.mxu0 %v1467_v32 }
 0x462   :  { %v2294_v2 = vpop.f32.mrf.mxu1 }
 0x463   :  { %v1427_v3 = vmax.f32 %v2294_v2, 1e-07 }
 0x464   :  { %v1407_v4 = vpop.f32.mrf.mxu1 }
 0x465   :  { %2463 = vrsqrt.f32 %v1427_v3  ;;  %v1426_v33 = vmax.f32 %v1407_v4, 1e-07  ;;  %vm1439_vm13 = vcmp.eq.f32.partialorder %v1427_v3, inf  ;;  %v1442_v49 = vand.u32 2147483648, %v1427_v3 }
 0x466   :  { %v2297_v6 = vpop.f32.mrf.mxu1  ;;  %vm1441_vm14 = vcmp.eq.f32.partialorder %v1427_v3, 0.0 }
 0x467   :  { %v1429_v7 = vmax.f32 %v2297_v6, 1e-07  ;;  %2465 = vrsqrt.f32 %v1426_v33  ;;  %vm1432_vm15 = vcmp.eq.f32.partialorder %v1426_v33, inf  ;;  %v1435_v13 = vand.u32 2147483648, %v1426_v33 }
 0x468   :  { %v1417_v8 = vpop.f32.mrf.mxu1  ;;  %vm1434_vm0 = vcmp.eq.f32.partialorder %v1426_v33, 0.0 }
 0x469   :  { %2467 = vrsqrt.f32 %v1429_v7  ;;  %v1428_v10 = vmax.f32 %v1417_v8, 1e-07  ;;  %vm1453_vm1 = vcmp.eq.f32.partialorder %v1429_v7, inf  ;;  %v1456_v22 = vand.u32 2147483648, %v1429_v7 }
 0x46a   :  { %vm1455_vm4 = vcmp.eq.f32.partialorder %v1429_v7, 0.0 }
 0x46b   :  { %2469 = vrsqrt.f32 %v1428_v10  ;;  %vm1446_vm2 = vcmp.eq.f32.partialorder %v1428_v10, inf  ;;  %v1449_v0 = vand.u32 2147483648, %v1428_v10  ;;  %vm1448_vm3 = vcmp.eq.f32.partialorder %v1428_v10, 0.0 }
 0x472   :  { %v2464_v43 = vpop.eup %2463 }
 0x473   :  { %v1438_v11 = vmul.f32 %v2464_v43, %v1427_v3 }
 0x474   :  { %v2466_v1 = vpop.eup %2465 }
 0x475   :  { %v1440_v58 = vsel %vm1439_vm13, %v1427_v3, %v1438_v11  ;;  %v1431_v51 = vmul.f32 %v2466_v1, %v1426_v33  ;;  %v2083_v1 = vld [vmem:[#allocation8] ss:$0 sm:$0xff] }
 0x476   :  { %v2468_v12 = vpop.eup %2467  ;;  %v1443_v16 = vsel %vm1441_vm14, %v1442_v49, %v1440_v58  ;;  %vm2705_vm14 = vmmov 0  }
 0x477   :  { %v1452_v14 = vmul.f32 %v2468_v12, %v1429_v7  ;;  %v1433_v36 = vsel %vm1432_vm15, %v1426_v33, %v1431_v51  ;;  %v1576_v5 = vmul.f32 %v1443_v16, %v1443_v16  ;;  %vm2034_vm15 = vcmask 1024  }
 0x478   :  { %v2470_v15 = vpop.eup %2469  ;;  %v1436_v18 = vsel %vm1434_vm0, %v1435_v13, %v1433_v36 }
 0x479   :  { %v1445_v19 = vmul.f32 %v2470_v15, %v1428_v10  ;;  %v1454_v20 = vsel %vm1453_vm1, %v1429_v7, %v1452_v14  ;;  %v1575_v21 = vmul.f32 %v1436_v18, %v1436_v18 }
 0x47a   :  { %v1457_v27 = vsel %vm1455_vm4, %v1456_v22, %v1454_v20 }
 0x47b   :  { %v1447_v23 = vsel %vm1446_vm2, %v1428_v10, %v1445_v19  ;;  %2320 = vmatprep.mubr.msk.f32.mxu1 %vm601_vm10, %v1575_v21  ;;  %v1578_v29 = vmul.f32 %v1457_v27, %v1457_v27 }
 0x47c   :  { %v1450_v26 = vsel %vm1448_vm3, %v1449_v0, %v1447_v23  ;;  %2321 = vmatmul.mubr.msk.f32.vlgmr.msra.gmra.mxu1 %vm601_vm10, %v1576_v5 }
 0x47d   :  { %v1577_v28 = vmul.f32 %v1450_v26, %v1450_v26 }
 0x47f   :  { %2323 = vmatprep.mubr.msk.f32.mxu1 %vm601_vm10, %v1577_v28 }
 0x480   :  { %2324 = vmatmul.mubr.msk.f32.gmra.mxu1 %vm601_vm10, %v1578_v29 }
 0x50c   :  { %v2308_v10 = vpop.f32.mrf.mxu0 }
 0x50d   :  { %v1562_v12 = vadd.f32 %v2308_v10, %v2083_v1 }
 0x50e   :  { %v1556_v11 = vpop.f32.mrf.mxu0 }
 0x50f   :  { %v1557_v13 = vadd.f32 %v2083_v1, %v1556_v11 }
 0x510   :  { %v2311_v58 = vpop.f32.mrf.mxu0 }
 0x511   :  { %v3178_v36 = vadd.f32 %v2311_v58, %v2083_v1 }
 0x512   :  { %v1566_v14 = vpop.f32.mrf.mxu0 }
 0x513   :  { %v1567_v21 = vadd.f32 %v2083_v1, %v1566_v14 }
 0x53c   :  { %v2322_v57 = vpop.f32.mrf.mxu1 }
 0x53d   :  { %v1677_v34 = vmax.f32 %v2322_v57, 1e-07 }
 0x53e   :  { %v1657_v35 = vpop.f32.mrf.mxu1 }
 0x53f   :  { %2471 = vrsqrt.f32 %v1677_v34  ;;  %v1676_v37 = vmax.f32 %v1657_v35, 1e-07  ;;  %vm1689_vm5 = vcmp.eq.f32.partialorder %v1677_v34, inf  ;;  %v1692_v45 = vand.u32 2147483648, %v1677_v34 }
 0x540   :  { %v2325_v38 = vpop.f32.mrf.mxu1  ;;  %vm1691_vm6 = vcmp.eq.f32.partialorder %v1677_v34, 0.0 }
 0x541   :  { %v1679_v62 = vmax.f32 %v2325_v38, 1e-07  ;;  %2473 = vrsqrt.f32 %v1676_v37  ;;  %vm1682_vm7 = vcmp.eq.f32.partialorder %v1676_v37, inf  ;;  %vm1684_vm8 = vcmp.eq.f32.partialorder %v1676_v37, 0.0 }
 0x542   :  { %v1667_v39 = vpop.f32.mrf.mxu1  ;;  %v1685_v52 = vand.u32 2147483648, %v1676_v37 }
 0x543   :  { %2475 = vrsqrt.f32 %v1679_v62  ;;  %v1678_v40 = vmax.f32 %v1667_v39, 1e-07  ;;  %vm1703_vm9 = vcmp.eq.f32.partialorder %v1679_v62, inf  ;;  %vm1705_vm11 = vcmp.eq.f32.partialorder %v1679_v62, 0.0 }
 0x544   :  { %v1706_v55 = vand.u32 2147483648, %v1679_v62 }
 0x545   :  { %2477 = vrsqrt.f32 %v1678_v40  ;;  %vm1696_vm12 = vcmp.eq.f32.partialorder %v1678_v40, inf  ;;  %v1699_v41 = vand.u32 2147483648, %v1678_v40  ;;  %vm1698_vm13 = vcmp.eq.f32.partialorder %v1678_v40, 0.0 }
 0x54c   :  { %v2472_v42 = vpop.eup %2471 }
 0x54d   :  { %v1688_v44 = vmul.f32 %v2472_v42, %v1677_v34 }
 0x54e   :  { %v2474_v46 = vpop.eup %2473 }
 0x54f   :  { %v1690_v25 = vsel %vm1689_vm5, %v1677_v34, %v1688_v44  ;;  %v1681_v17 = vmul.f32 %v2474_v46, %v1676_v37 }
 0x550   :  { %v2476_v47 = vpop.eup %2475  ;;  %v1693_v48 = vsel %vm1691_vm6, %v1692_v45, %v1690_v25 }
 0x551   :  { %v3158_v50 = vadd.f32 1e-06, %v1693_v48  ;;  %v1702_v24 = vmul.f32 %v2476_v47, %v1679_v62  ;;  %v1683_v54 = vsel %vm1682_vm7, %v1676_v37, %v1681_v17 }
 0x552   :  { %v2478_v53 = vpop.eup %2477  ;;  %v1686_v59 = vsel %vm1684_vm8, %v1685_v52, %v1683_v54 }
 0x553   :  { %v1695_v56 = vmul.f32 %v2478_v53, %v1678_v40  ;;  %v1713_v60 = vmax.f32 %v3158_v50, 1e-06  ;;  %v1704_v61 = vsel %vm1703_vm9, %v1679_v62, %v1702_v24  ;;  %v3161_v63 = vadd.f32 1e-06, %v1686_v59 }
 0x554   :  { %v1707_v2 = vsel %vm1705_vm11, %v1706_v55, %v1704_v61 }
 0x555   :  { %2479 = vrcp.f32 %v1713_v60  ;;  %v1697_v3 = vsel %vm1696_vm12, %v1678_v40, %v1695_v56  ;;  %v3165_v4 = vadd.f32 1e-06, %v1707_v2  ;;  %v1712_v33 = vmax.f32 %v3161_v63, 1e-06 }
 0x556   :  { %v1700_v6 = vsel %vm1698_vm13, %v1699_v41, %v1697_v3 }
 0x557   :  { %v3168_v7 = vadd.f32 1e-06, %v1700_v6  ;;  %v1715_v8 = vmax.f32 %v3165_v4, 1e-06  ;;  %2481 = vrcp.f32 %v1712_v33  ;;  %v1953_v4 = vld [vmem:[#allocation14 + $0x18] sm:$0xff] }
 0x559   :  { %v1714_v43 = vmax.f32 %v3168_v7, 1e-06  ;;  %2483 = vrcp.f32 %v1715_v8  ;;  %v1952_v7 = vld [vmem:[#allocation14 + $0x10] sm:$0xff] }
 0x55b   :  { %2485 = vrcp.f32 %v1714_v43 }
 0x562   :  { %v2480_v49 = vpop.eup %2479 }
 0x563   :  { %v1721_v51 = vmul.f32 %v2480_v49, %v1562_v12 }
 0x564   :  { %v2482_v15 = vpop.eup %2481 }
 0x565   :  { %v1725_v16 = vmul.f32 0.70710677, %v1721_v51  ;;  %v1741_v18 = vmul.f32 -0.5, %v1721_v51  ;;  %v1720_v20 = vmul.f32 %v2482_v15, %v1557_v13 }
 0x566   :  { %v2484_v19 = vpop.eup %2483 }
 0x567   :  { %2487 = verf.f32 %v1725_v16  ;;  %v1745_v0 = vmul.f32 %v1741_v18, %v1721_v51  ;;  %v1723_v22 = vmul.f32 %v2484_v19, %v3178_v36  ;;  %v1724_v23 = vmul.f32 0.70710677, %v1720_v20  ;;  %v2092_v51 = vld [vmem:[#allocation13] ss:$0 sm:$0xff]  ;;  %v1875_v19 = vld [vmem:[%s3249_s30] sm:$0x3] }
 0x568   :  { %v2486_v5 = vpop.eup %2485  ;;  %v1740_v26 = vmul.f32 -0.5, %v1720_v20 }
 0x569   :  { %v1750_v27 = vmul.f32 1.442695, %v1745_v0  ;;  %v1722_v28 = vmul.f32 %v2486_v5, %v1567_v21  ;;  %v1727_v29 = vmul.f32 0.70710677, %v1723_v22  ;;  %v1743_v9 = vmul.f32 -0.5, %v1723_v22 }
 0x56a   :  { %2489 = verf.f32 %v1724_v23  ;;  %v1744_v30 = vmul.f32 %v1740_v26, %v1720_v20  ;;  %v1951_v20 = vld [vmem:[#allocation14 + $0x8] sm:$0xff]  ;;  %v2098_v23 = vld [vmem:[#allocation2] ss:$0 sm:$0xff] }
 0x56b   :  { %2491 = vpow2.f32 %v1750_v27  ;;  %v1726_v31 = vmul.f32 0.70710677, %v1722_v28  ;;  %v1742_v32 = vmul.f32 -0.5, %v1722_v28  ;;  %v1747_v57 = vmul.f32 %v1743_v9, %v1723_v22 }
 0x56c   :  { %v1748_v34 = vmul.f32 1.442695, %v1744_v30  ;;  %2493 = verf.f32 %v1727_v29 }
 0x56d   :  { %2495 = verf.f32 %v1726_v31  ;;  %v1746_v35 = vmul.f32 %v1742_v32, %v1722_v28  ;;  %v1754_v37 = vmul.f32 1.442695, %v1747_v57 }
 0x56e   :  { %2497 = vpow2.f32 %v1748_v34 }
 0x56f   :  { %v1752_v38 = vmul.f32 1.442695, %v1746_v35  ;;  %2499 = vpow2.f32 %v1754_v37 }
 0x571   :  { %2501 = vpow2.f32 %v1752_v38 }
 0x574   :  { %v2488_v62 = vpop.eup %2487 }
 0x575   :  { %v1733_v40 = vadd.f32 1.0, %v2488_v62 }
 0x577   :  { %v2490_v39 = vpop.eup %2489  ;;  %v1737_v17 = vmul.f32 0.5, %v1733_v40 }
 0x578   :  { %v2492_v42 = vpop.eup %2491  ;;  %v1732_v44 = vadd.f32 1.0, %v2490_v39 }
 0x579   :  { %v2494_v45 = vpop.eup %2493  ;;  %v1757_v46 = vmul.f32 0.3989423, %v2492_v42  ;;  %v1761_v3 = vmul.f32 %v1737_v17, %v1562_v12  ;;  %v2704_v12 = vmov 0.0  }
 0x57a   :  { %v2496_v25 = vpop.eup %2495  ;;  %v1736_v47 = vmul.f32 0.5, %v1732_v44  ;;  %v1735_v52 = vadd.f32 1.0, %v2494_v45  ;;  %2340 = vmatprep.subr.mxu1 %v2704_v12  ;;  %2351 = vmatprep.subr.mxu0 %v2704_v12 }
 0x57b   :  { %v2498_v48 = vpop.eup %2497  ;;  %v1734_v24 = vadd.f32 1.0, %v2496_v25  ;;  %v1765_v55 = vmul.f32 %v1757_v46, %v1713_v60  ;;  %2348 = vmatprep.mubr.msk.f32.mxu1 %vm2705_vm14, %v2704_v12 }
 0x57c   :  { %v2500_v53 = vpop.eup %2499  ;;  %v1756_v54 = vmul.f32 0.3989423, %v2498_v48  ;;  %v1760_v41 = vmul.f32 %v1736_v47, %v1557_v13  ;;  %v1739_v10 = vmul.f32 0.5, %v1735_v52 }
 0x57d   :  { %v1738_v56 = vmul.f32 0.5, %v1734_v24  ;;  %v1759_v59 = vmul.f32 0.3989423, %v2500_v53  ;;  %v1769_v1 = vadd.f32 %v1765_v55, %v1761_v3 }
 0x57e   :  { %v2502_v61 = vpop.eup %2501  ;;  %v1764_v2 = vmul.f32 %v1756_v54, %v1712_v33  ;;  %v1763_v63 = vmul.f32 %v1739_v10, %v3178_v36 }
 0x57f   :  { %v1758_v6 = vmul.f32 0.3989423, %v2502_v61  ;;  %v1762_v58 = vmul.f32 %v1738_v56, %v1567_v21  ;;  %v1767_v50 = vmul.f32 %v1759_v59, %v1715_v8  ;;  %v1950_v21 = vld [vmem:[#allocation14] sm:$0xff] }
 0x580   :  { %v1768_v11 = vadd.f32 %v1764_v2, %v1760_v41 }
 0x581   :  { %v1766_v49 = vmul.f32 %v1758_v6, %v1714_v43  ;;  %v1771_v33 = vadd.f32 %v1767_v50, %v1763_v63 }
 0x582   :  { %2334 = vmatprep.mubr.msk.f32.mxu0 %vm601_vm10, %v1768_v11 }
 0x583   :  { %2335 = vmatmul.mubr.msk.f32.vlgmr.msra.gmra.mxu0 %vm601_vm10, %v1769_v1  ;;  %v1770_v60 = vadd.f32 %v1766_v49, %v1762_v58 }
 0x584   :  { %2352 = vmatpush3.msra.mxu0 %v1953_v4 }
 0x585   :  { %2337 = vmatprep.mubr.msk.f32.mxu0 %vm601_vm10, %v1770_v60  ;;  %2353 = vmatprep.subr.mxu0 %v2704_v12 }
 0x586   :  { %2354 = vmatpush3.msra.mxu0 %v1952_v7 }
 0x587   :  { %2338 = vmatmul.mubr.msk.f32.gmra.mxu0 %vm601_vm10, %v1771_v33  ;;  %2355 = vmatprep.subr.mxu0 %v2704_v12 }
 0x588   :  { %2359 = vmatprep.mubr.msk.f32.mxu0 %vm2705_vm14, %v2704_v12  ;;  %2356 = vmatpush3.msra.mxu0 %v1951_v20 }
 0x589   :  { %2357 = vmatprep.subr.mxu0 %v2704_v12 }
 0x58a   :  { %2358 = vmatpush3.msra.mxu0 %v1950_v21 }
 0x643   :  { %v2336_v8 = vpop.f32.mrf.mxu0 }
 0x644   :  { %v1862_v16 = vadd.f32 %v2336_v8, %v2092_v51 }
 0x645   :  { %v1856_v43 = vpop.f32.mrf.mxu0 }
 0x646   :  { %v1857_v18 = vadd.f32 %v2092_v51, %v1856_v43 }
 0x647   :  { %v2339_v13 = vpop.f32.mrf.mxu0 }
 0x648   :  { %v1872_v14 = vadd.f32 %v2339_v13, %v2092_v51 }
 0x649   :  { %v1866_v15 = vpop.f32.mrf.mxu0 }
 0x64a   :  { %v1867_v36 = vadd.f32 %v2092_v51, %v1866_v15  ;;  %2341 = vmatpush3.msra.mxu1 %v1872_v14 }
 0x64b   :  { %2342 = vmatprep.subr.mxu1 %v2704_v12 }
 0x64c   :  { %2343 = vmatpush3.msra.mxu1 %v1867_v36 }
 0x64d   :  { %2344 = vmatprep.subr.mxu1 %v2704_v12 }
 0x64e   :  { %2345 = vmatpush3.msra.mxu1 %v1862_v16 }
 0x64f   :  { %2346 = vmatprep.subr.mxu1 %v2704_v12 }
 0x650   :  { %2347 = vmatpush3.msra.mxu1 %v1857_v18 }
 0x651   :  { %2349 = vmatmul.mubr.msk.f32.vlgmr.msra.gmra.mxu1 %vm601_vm10, %v1875_v19 }
 0x711   :  { %v1945_v0 = vpop.f32.mrf.mxu1 }
 0x712   :  { %v1949_v22 = vmul.f32 0.0625, %v1945_v0 }
 0x713   :  { %v2350_v5 = vpop.f32.mrf.mxu1 }
 0x714   :  { %2360 = vmatmul.mubr.msk.f32.vlgmr.msra.gmra.mxu0 %vm601_vm10, %v1949_v22 }
 0x7d4   :  { %v2030_v26 = vpop.f32.mrf.mxu0 }
 0x7d5   :  { %v2031_v27 = vadd.f32 %v2098_v23, %v2030_v26 }
 0x7d6   :  { %v2361_v28 = vpop.f32.mrf.mxu0 }
 0x7d7   :  { %2035 = vst.msk [vmem:[%s3226_s24] sm:$0x3] %vm2034_vm15, %v2031_v27 }
 0x7d8   :  { %2040 = vsyncpa [#allocation4], 1 }
 0x7d9   :  { %2041 = vsyncpa [#allocation6], 1 }
 0x7da   :  { %2042 = vsyncpa [#allocation9], 1 }
 0x7db   :  { %2043 = vsyncpa [#allocation12], 1 }
 0x7dc   :  { %2044 = vsyncpa [#allocation15], 1 }

</bundles_post_ra>
